<compile_context>
chip_gen: v7x
topology: tpu7x:2x2x1
jax: 0.10.0
libtpu: 0.0.40
codegen_flags: <defaults>
</compile_context>

<pallas_src>
import functools

import jax
import jax.numpy as jnp
import numpy as np
from jax import lax
from jax.experimental import pallas as pl
from jax.experimental.pallas import tpu as pltpu


def _round_up(x: int, m: int) -> int:
    return ((x + m - 1) // m) * m


def _mxu_rows() -> int:
    """Target MXU M per grid step: 256 on the 256-wide MXUs (v6e/v7x), 128 otherwise."""
    try:
        kind = jax.devices()[0].device_kind.lower()
    except Exception:
        return 128
    if "v6" in kind or "v7" in kind or "tpu7" in kind:
        return 256
    return 128


def _matcher_kernel(q_ref, k_ref, o_ref, *, seq_len: int,
                    queries_per_step: int, keys_per_step: int):
    """One grid step: TQ queries x one K_TILE slab of the gallery.

    q_ref: [TQ*T, Z]       compute dtype -- row (q*T + t) = chunk t of query q
    k_ref: [T, K_TILE, Z]  compute dtype -- k_ref[s] = chunk s of every key in this slab
    o_ref: [TQ, K_TILE]    f32           -- lane-dense output block owned by this step
    """
    T = seq_len
    TQ = queries_per_step
    KT = keys_per_step

    q = q_ref[...]

    run_max = None      # [TQ*T, KT] running elementwise max over s
    sum_max_t = None    # [TQ,  KT] running sum over s of (max over t)

    # T is a small compile-time constant: unroll so the LLO scheduler sees everything.
    for s in range(T):
        m_s = lax.dot_general(
            q, k_ref[s],
            dimension_numbers=(((1,), (1,)), ((), ())),
            preferred_element_type=jnp.float32,
        )  # [TQ*T, KT]  (rows = (q, t), lanes = k)
        # max over t for this s: pure sublane-group reduction (leading-dim split only).
        max_t_s = jnp.max(m_s.reshape(TQ, T, KT), axis=1)  # [TQ, KT]
        if s == 0:
            run_max, sum_max_t = m_s, max_t_s
        else:
            run_max = jnp.maximum(run_max, m_s)
            sum_max_t = sum_max_t + max_t_s

    # sum over t of (max over s): another sublane-group reduction.
    sum_t_max_s = jnp.sum(run_max.reshape(TQ, T, KT), axis=1)  # [TQ, KT]

    score = (sum_max_t + sum_t_max_s) * (1.0 / (2.0 * T))
    o_ref[...] = jax.nn.sigmoid(score)   # full-width, unmasked store


def matcher_forward(tgt, memory, seq_len: int, *, compute_dtype=jnp.bfloat16,
                    label=None, training=False):
    """Pallas implementation of Matcher.forward.

    Returns (score_p, score_p) in eval mode, (score_p, score_p, label) in training mode.
    Note: MXU operands are cast to `compute_dtype` (bf16 by default); pass
    compute_dtype=jnp.float32 for bit-closer parity with the f32 PyTorch module.
    """
    Q, D5 = tgt.shape
    K, D5k = memory.shape
    assert D5 == D5k and D5 % seq_len == 0
    T = seq_len
    Z = D5 // T

    # ---- tile sizes -------------------------------------------------------
    rows = _mxu_rows()
    TQ = max(1, -(-rows // T))
    while (TQ * T) % 8 or TQ % 8:        # sublane-aligned matmul rows AND output rows
        TQ += 1
    QP = _round_up(Q, TQ)

    K_TILE = 128 if _round_up(K, 128) <= 128 else 256   # multiple of 128 -> lane-dense
    KP = _round_up(K, K_TILE)

    # ---- operand prep (one-time XLA ops, stays in HBM) --------------------
    q = tgt.astype(compute_dtype)
    if QP != Q:
        q = jnp.concatenate([q, jnp.zeros((QP - Q, D5), compute_dtype)], axis=0)
    qf = q.reshape(QP * T, Z)                                  # [QP*T, Z]

    km = memory.astype(compute_dtype)
    if KP != K:
        km = jnp.concatenate([km, jnp.zeros((KP - K, D5), compute_dtype)], axis=0)
    kf = km.reshape(KP, T, Z).transpose(1, 0, 2)               # [T, KP, Z]

    # ---- explicit VMEM budget (review item: v5e default scoped is 16 MiB) -
    cb = jnp.dtype(compute_dtype).itemsize
    est = (2 * TQ * T * Z * cb            # q block, double-buffered
           + 2 * T * K_TILE * Z * cb      # k block, double-buffered
           + 2 * TQ * K_TILE * 4          # out block, double-buffered
           + 8 * TQ * T * K_TILE * 4)     # matmul result + running max/sum headroom
    vmem_limit = int(min(64 * 2**20, max(16 * 2**20, 2 * est)))

    kernel = functools.partial(
        _matcher_kernel, seq_len=T, queries_per_step=TQ, keys_per_step=K_TILE)

    out = pl.pallas_call(
        kernel,
        out_shape=jax.ShapeDtypeStruct((QP, KP), jnp.float32),
        grid_spec=pltpu.PrefetchScalarGridSpec(
            num_scalar_prefetch=0,
            # Gallery tiles on the outer axis (each K_TILE slab is DMA'd once),
            # query tiles stream on the inner axis.
            grid=(KP // K_TILE, QP // TQ),
            in_specs=[
                pl.BlockSpec((TQ * T, Z), lambda j, i: (i, 0)),     # query chunks
                pl.BlockSpec((T, K_TILE, Z), lambda j, i: (0, j, 0)),  # gallery slab
            ],
            out_specs=pl.BlockSpec((TQ, K_TILE), lambda j, i: (i, j)),
        ),
        compiler_params=pltpu.CompilerParams(
            dimension_semantics=("parallel", "parallel"),
            vmem_limit_bytes=vmem_limit,
        ),
    )(qf, kf)

    score_p = out[:Q, :K]
    if training:
        return score_p, score_p, label
    return score_p, score_p


def matcher_reference(tgt, memory, seq_len: int):
    """Pure-JAX reference mirroring the PyTorch forward (f32 math)."""
    Q, D5 = tgt.shape
    K = memory.shape[0]
    Z = D5 // seq_len
    qt = tgt.reshape(Q, seq_len, Z).astype(jnp.float32)
    km = memory.reshape(K, seq_len, Z).astype(jnp.float32)
    score = jnp.einsum('qtd,ksd->qkst', qt, km)
    score_p = jnp.concatenate(
        [jnp.max(score, axis=2), jnp.max(score, axis=3)], axis=-1
    ).mean(axis=-1)
    return jax.nn.sigmoid(score_p)


if __name__ == "__main__":
    # Small shapes consistent with the forward: tgt [Q, D5], memory [K, D5], D5 = seq_len * Z
    seq_len = 8
    Z = 32
    D5 = seq_len * Z   # 256
    Q, K = 8, 16

    key = jax.random.PRNGKey(0)
    k1, k2 = jax.random.split(key)
    tgt = jax.random.normal(k1, (Q, D5), dtype=jnp.float32)
    memory = jax.random.normal(k2, (K, D5), dtype=jnp.float32)

    out, out2 = matcher_forward(tgt, memory, seq_len)
    out = jax.block_until_ready(out)
    assert out.shape == (Q, K)

    # Compare against the f32 reference evaluated on the same bf16-rounded inputs the
    # kernel feeds the MXU (bf16 operands, f32 accumulation).
    ref = matcher_reference(tgt.astype(jnp.bfloat16).astype(jnp.float32),
                            memory.astype(jnp.bfloat16).astype(jnp.float32), seq_len)
    np.testing.assert_allclose(np.asarray(out), np.asarray(ref), rtol=2e-3, atol=1e-3)

    print("KERNEL_OK")
</pallas_src>

<mosaic_0001>
module attributes {stable_mosaic.version = 11 : i64} {
  func.func @_matcher_kernel(%arg0: i32, %arg1: i32, %arg2: memref<128x32xbf16, #tpu.memory_space<vmem>>, %arg3: memref<8x128x32xbf16, #tpu.memory_space<vmem>>, %arg4: memref<16x128xf32, #tpu.memory_space<vmem>>) attributes {dimension_semantics = [#tpu.dimension_semantics<parallel>, #tpu.dimension_semantics<parallel>], iteration_bounds = array<i64: 1, 1>, scalar_prefetch = 0 : i64, scratch_operands = 0 : i64, tpu.core_type = #tpu.core_type<tc>, window_params = [{transform_indices = @transform_0, window_bounds = array<i64: 128, 32>}, {transform_indices = @transform_1, window_bounds = array<i64: 8, 128, 32>}, {transform_indices = @transform_2, window_bounds = array<i64: 16, 128>}]} {
    %c0 = arith.constant 0 : index
    %c0_0 = arith.constant 0 : index
    %0 = vector.load %arg2[%c0, %c0_0] : memref<128x32xbf16, #tpu.memory_space<vmem>>, vector<128x32xbf16>
    %c0_1 = arith.constant 0 : index
    %c0_2 = arith.constant 0 : index
    %c0_3 = arith.constant 0 : index
    %1 = vector.load %arg3[%c0_1, %c0_2, %c0_3] : memref<8x128x32xbf16, #tpu.memory_space<vmem>>, vector<1x128x32xbf16>
    %2 = vector.shape_cast %1 : vector<1x128x32xbf16> to vector<128x32xbf16>
    %cst = arith.constant dense<0.000000e+00> : vector<128x128xf32>
    %3 = tpu.matmul %0, %2, %cst {dimension_numbers = #tpu.dot_dimension_numbers<[1], [1], [0], [0], [0, 0, 1, 0], [], []>} : vector<128x32xbf16>, vector<128x32xbf16>, vector<128x128xf32> -> vector<128x128xf32>
    %4 = vector.shape_cast %3 : vector<128x128xf32> to vector<16x8x128xf32>
    %cst_4 = arith.constant dense<0xFF800000> : vector<16x128xf32>
    %5 = vector.multi_reduction <maximumf>, %4, %cst_4 [1] : vector<16x8x128xf32> to vector<16x128xf32>
    %c1 = arith.constant 1 : index
    %c0_5 = arith.constant 0 : index
    %c0_6 = arith.constant 0 : index
    %6 = vector.load %arg3[%c1, %c0_5, %c0_6] : memref<8x128x32xbf16, #tpu.memory_space<vmem>>, vector<1x128x32xbf16>
    %7 = vector.shape_cast %6 : vector<1x128x32xbf16> to vector<128x32xbf16>
    %cst_7 = arith.constant dense<0.000000e+00> : vector<128x128xf32>
    %8 = tpu.matmul %0, %7, %cst_7 {dimension_numbers = #tpu.dot_dimension_numbers<[1], [1], [0], [0], [0, 0, 1, 0], [], []>} : vector<128x32xbf16>, vector<128x32xbf16>, vector<128x128xf32> -> vector<128x128xf32>
    %9 = vector.shape_cast %8 : vector<128x128xf32> to vector<16x8x128xf32>
    %cst_8 = arith.constant dense<0xFF800000> : vector<16x128xf32>
    %10 = vector.multi_reduction <maximumf>, %9, %cst_8 [1] : vector<16x8x128xf32> to vector<16x128xf32>
    %11 = arith.maximumf %3, %8 : vector<128x128xf32>
    %12 = arith.addf %5, %10 : vector<16x128xf32>
    %c2 = arith.constant 2 : index
    %c0_9 = arith.constant 0 : index
    %c0_10 = arith.constant 0 : index
    %13 = vector.load %arg3[%c2, %c0_9, %c0_10] : memref<8x128x32xbf16, #tpu.memory_space<vmem>>, vector<1x128x32xbf16>
    %14 = vector.shape_cast %13 : vector<1x128x32xbf16> to vector<128x32xbf16>
    %cst_11 = arith.constant dense<0.000000e+00> : vector<128x128xf32>
    %15 = tpu.matmul %0, %14, %cst_11 {dimension_numbers = #tpu.dot_dimension_numbers<[1], [1], [0], [0], [0, 0, 1, 0], [], []>} : vector<128x32xbf16>, vector<128x32xbf16>, vector<128x128xf32> -> vector<128x128xf32>
    %16 = vector.shape_cast %15 : vector<128x128xf32> to vector<16x8x128xf32>
    %cst_12 = arith.constant dense<0xFF800000> : vector<16x128xf32>
    %17 = vector.multi_reduction <maximumf>, %16, %cst_12 [1] : vector<16x8x128xf32> to vector<16x128xf32>
    %18 = arith.maximumf %11, %15 : vector<128x128xf32>
    %19 = arith.addf %12, %17 : vector<16x128xf32>
    %c3 = arith.constant 3 : index
    %c0_13 = arith.constant 0 : index
    %c0_14 = arith.constant 0 : index
    %20 = vector.load %arg3[%c3, %c0_13, %c0_14] : memref<8x128x32xbf16, #tpu.memory_space<vmem>>, vector<1x128x32xbf16>
    %21 = vector.shape_cast %20 : vector<1x128x32xbf16> to vector<128x32xbf16>
    %cst_15 = arith.constant dense<0.000000e+00> : vector<128x128xf32>
    %22 = tpu.matmul %0, %21, %cst_15 {dimension_numbers = #tpu.dot_dimension_numbers<[1], [1], [0], [0], [0, 0, 1, 0], [], []>} : vector<128x32xbf16>, vector<128x32xbf16>, vector<128x128xf32> -> vector<128x128xf32>
    %23 = vector.shape_cast %22 : vector<128x128xf32> to vector<16x8x128xf32>
    %cst_16 = arith.constant dense<0xFF800000> : vector<16x128xf32>
    %24 = vector.multi_reduction <maximumf>, %23, %cst_16 [1] : vector<16x8x128xf32> to vector<16x128xf32>
    %25 = arith.maximumf %18, %22 : vector<128x128xf32>
    %26 = arith.addf %19, %24 : vector<16x128xf32>
    %c4 = arith.constant 4 : index
    %c0_17 = arith.constant 0 : index
    %c0_18 = arith.constant 0 : index
    %27 = vector.load %arg3[%c4, %c0_17, %c0_18] : memref<8x128x32xbf16, #tpu.memory_space<vmem>>, vector<1x128x32xbf16>
    %28 = vector.shape_cast %27 : vector<1x128x32xbf16> to vector<128x32xbf16>
    %cst_19 = arith.constant dense<0.000000e+00> : vector<128x128xf32>
    %29 = tpu.matmul %0, %28, %cst_19 {dimension_numbers = #tpu.dot_dimension_numbers<[1], [1], [0], [0], [0, 0, 1, 0], [], []>} : vector<128x32xbf16>, vector<128x32xbf16>, vector<128x128xf32> -> vector<128x128xf32>
    %30 = vector.shape_cast %29 : vector<128x128xf32> to vector<16x8x128xf32>
    %cst_20 = arith.constant dense<0xFF800000> : vector<16x128xf32>
    %31 = vector.multi_reduction <maximumf>, %30, %cst_20 [1] : vector<16x8x128xf32> to vector<16x128xf32>
    %32 = arith.maximumf %25, %29 : vector<128x128xf32>
    %33 = arith.addf %26, %31 : vector<16x128xf32>
    %c5 = arith.constant 5 : index
    %c0_21 = arith.constant 0 : index
    %c0_22 = arith.constant 0 : index
    %34 = vector.load %arg3[%c5, %c0_21, %c0_22] : memref<8x128x32xbf16, #tpu.memory_space<vmem>>, vector<1x128x32xbf16>
    %35 = vector.shape_cast %34 : vector<1x128x32xbf16> to vector<128x32xbf16>
    %cst_23 = arith.constant dense<0.000000e+00> : vector<128x128xf32>
    %36 = tpu.matmul %0, %35, %cst_23 {dimension_numbers = #tpu.dot_dimension_numbers<[1], [1], [0], [0], [0, 0, 1, 0], [], []>} : vector<128x32xbf16>, vector<128x32xbf16>, vector<128x128xf32> -> vector<128x128xf32>
    %37 = vector.shape_cast %36 : vector<128x128xf32> to vector<16x8x128xf32>
    %cst_24 = arith.constant dense<0xFF800000> : vector<16x128xf32>
    %38 = vector.multi_reduction <maximumf>, %37, %cst_24 [1] : vector<16x8x128xf32> to vector<16x128xf32>
    %39 = arith.maximumf %32, %36 : vector<128x128xf32>
    %40 = arith.addf %33, %38 : vector<16x128xf32>
    %c6 = arith.constant 6 : index
    %c0_25 = arith.constant 0 : index
    %c0_26 = arith.constant 0 : index
    %41 = vector.load %arg3[%c6, %c0_25, %c0_26] : memref<8x128x32xbf16, #tpu.memory_space<vmem>>, vector<1x128x32xbf16>
    %42 = vector.shape_cast %41 : vector<1x128x32xbf16> to vector<128x32xbf16>
    %cst_27 = arith.constant dense<0.000000e+00> : vector<128x128xf32>
    %43 = tpu.matmul %0, %42, %cst_27 {dimension_numbers = #tpu.dot_dimension_numbers<[1], [1], [0], [0], [0, 0, 1, 0], [], []>} : vector<128x32xbf16>, vector<128x32xbf16>, vector<128x128xf32> -> vector<128x128xf32>
    %44 = vector.shape_cast %43 : vector<128x128xf32> to vector<16x8x128xf32>
    %cst_28 = arith.constant dense<0xFF800000> : vector<16x128xf32>
    %45 = vector.multi_reduction <maximumf>, %44, %cst_28 [1] : vector<16x8x128xf32> to vector<16x128xf32>
    %46 = arith.maximumf %39, %43 : vector<128x128xf32>
    %47 = arith.addf %40, %45 : vector<16x128xf32>
    %c7 = arith.constant 7 : index
    %c0_29 = arith.constant 0 : index
    %c0_30 = arith.constant 0 : index
    %48 = vector.load %arg3[%c7, %c0_29, %c0_30] : memref<8x128x32xbf16, #tpu.memory_space<vmem>>, vector<1x128x32xbf16>
    %49 = vector.shape_cast %48 : vector<1x128x32xbf16> to vector<128x32xbf16>
    %cst_31 = arith.constant dense<0.000000e+00> : vector<128x128xf32>
    %50 = tpu.matmul %0, %49, %cst_31 {dimension_numbers = #tpu.dot_dimension_numbers<[1], [1], [0], [0], [0, 0, 1, 0], [], []>} : vector<128x32xbf16>, vector<128x32xbf16>, vector<128x128xf32> -> vector<128x128xf32>
    %51 = vector.shape_cast %50 : vector<128x128xf32> to vector<16x8x128xf32>
    %cst_32 = arith.constant dense<0xFF800000> : vector<16x128xf32>
    %52 = vector.multi_reduction <maximumf>, %51, %cst_32 [1] : vector<16x8x128xf32> to vector<16x128xf32>
    %53 = arith.maximumf %46, %50 : vector<128x128xf32>
    %54 = arith.addf %47, %52 : vector<16x128xf32>
    %55 = vector.shape_cast %53 : vector<128x128xf32> to vector<16x8x128xf32>
    %cst_33 = arith.constant dense<0.000000e+00> : vector<16x128xf32>
    %56 = vector.multi_reduction <add>, %55, %cst_33 [1] : vector<16x8x128xf32> to vector<16x128xf32>
    %57 = arith.addf %54, %56 : vector<16x128xf32>
    %cst_34 = arith.constant 6.250000e-02 : f32
    %58 = vector.broadcast %cst_34 : f32 to vector<16x128xf32>
    %59 = arith.mulf %57, %58 : vector<16x128xf32>
    %60 = arith.negf %59 : vector<16x128xf32>
    %61 = math.exp %60 : vector<16x128xf32>
    %cst_35 = arith.constant 1.000000e+00 : f32
    %62 = vector.broadcast %cst_35 : f32 to vector<16x128xf32>
    %63 = arith.addf %62, %61 : vector<16x128xf32>
    %64 = arith.divf %62, %63 : vector<16x128xf32>
    %c0_36 = arith.constant 0 : index
    %c0_37 = arith.constant 0 : index
    %65 = vector.load %arg4[%c0_36, %c0_37] : memref<16x128xf32, #tpu.memory_space<vmem>>, vector<16x128xf32>
    tpu.vector_store %arg4[%c0_36, %c0_37], %64 {strides = array<i32>} : memref<16x128xf32, #tpu.memory_space<vmem>>, vector<16x128xf32>,
    return
  }
  func.func @transform_0(%arg0: i32, %arg1: i32) -> (i32, i32) {
    %c0_i32 = arith.constant 0 : i32
    %c0_i32_0 = arith.constant 0 : i32
    return %arg1, %c0_i32 : i32, i32
  }
  func.func @transform_1(%arg0: i32, %arg1: i32) -> (i32, i32, i32) {
    %c0_i32 = arith.constant 0 : i32
    %c0_i32_0 = arith.constant 0 : i32
    %c0_i32_1 = arith.constant 0 : i32
    return %c0_i32, %arg0, %c0_i32_0 : i32, i32, i32
  }
  func.func @transform_2(%arg0: i32, %arg1: i32) -> (i32, i32) {
    %c0_i32 = arith.constant 0 : i32
    return %arg1, %arg0 : i32, i32
  }
}

</mosaic_0001>

<bundles_post_ra>
// kernel: tpu_custom_call.1
= control target key start
LH: loop header
LB: loop body
LE: loop exit
PB: predicated region body
PF: predicated region fallthrough
CT: control target
= control target key end

     0   :  { %vm125_vm0 = vcmask 261120   ;;  %s5135_s0 = inlined_call_operand.vmem [shape: bf16[128,32], index: 0, kind: input, shape index: {}]   ;;  %s5136_s1 = inlined_call_operand.vmem [shape: bf16[8,128,32], index: 1, kind: input, shape index: {}]   ;;  %s5137_s2 = inlined_call_operand.hbm [shape: f32[16,128], index: 2, kind: output, shape index: {}]  }
   0x1   :  { %v3505_v0 = vld [vmem:[%s5136_s1] sm:$0xff]   ;;  %v3507_v3 = vld [vmem:[%s5136_s1 + $0x8] sm:$0xff]   ;;  %v3509_v7 = vld [vmem:[%s5136_s1 + $0x10] sm:$0xff]  }
   0x2   :  { %v3506_v1 = vld [vmem:[%s5136_s1 + $0x40] sm:$0xff]   ;;  %3438 = vmatprep.subr.msk.bf16.mxu0 %vm125_vm0, %v3505_v0  ;;  %v151_v2 = vsel %vm125_vm0, %v3505_v0, 0  ;;  %v3508_v5 = vld [vmem:[%s5136_s1 + $0x48] sm:$0xff]   ;;  %v154_v6 = vsel %vm125_vm0, %v3507_v3, 0  ;;  %v3510_v9 = vld [vmem:[%s5136_s1 + $0x50] sm:$0xff]   ;;  %v157_v11 = vsel %vm125_vm0, %v3509_v7, 0 }
   0x3   :  { %3446 = vmatprep.subr.msk.bf16.mxu1 %vm125_vm0, %v3506_v1  ;;  %3183 = vmatpush3.bf16.xpose.msra.mxu0 %v151_v2  ;;  %v425_v4 = vsel %vm125_vm0, %v3506_v1, 0  ;;  %v428_v8 = vsel %vm125_vm0, %v3508_v5, 0  ;;  %v3511_v10 = vld [vmem:[%s5136_s1 + $0x18] sm:$0xff]   ;;  %v3718_v12 = vld [vmem:[%s5135_s0] sm:$0xff]   ;;  %v431_v13 = vsel %vm125_vm0, %v3510_v9, 0  ;;  %v3515_v20 = vld [vmem:[%s5136_s1 + $0x28] sm:$0xff]  }
   0x4   :  { %3215 = vmatpush3.bf16.xpose.msra.mxu1 %v425_v4  ;;  %3439 = vmatprep.subr.msk.bf16.mxu0 %vm125_vm0, %v3507_v3  ;;  %v3512_v14 = vld [vmem:[%s5136_s1 + $0x58] sm:$0xff]   ;;  %v160_v15 = vsel %vm125_vm0, %v3511_v10, 0  ;;  %v3513_v16 = vld [vmem:[%s5136_s1 + $0x20] sm:$0xff]   ;;  %v3516_v22 = vld [vmem:[%s5136_s1 + $0x68] sm:$0xff]   ;;  %v166_v23 = vsel %vm125_vm0, %v3515_v20, 0 }
   0x5   :  { %3447 = vmatprep.subr.msk.bf16.mxu1 %vm125_vm0, %v3508_v5  ;;  %3198 = vmatprep.mubr.msk.bf16.mxu0 %vm125_vm0, %v3718_v12  ;;  %v434_v17 = vsel %vm125_vm0, %v3512_v14, 0  ;;  %v3514_v18 = vld [vmem:[%s5136_s1 + $0x60] sm:$0xff]   ;;  %v163_v19 = vsel %vm125_vm0, %v3513_v16, 0  ;;  %v3517_v24 = vld [vmem:[%s5136_s1 + $0x30] sm:$0xff]   ;;  %v440_v25 = vsel %vm125_vm0, %v3516_v22, 0  ;;  %v3519_v28 = vld [vmem:[%s5136_s1 + $0x38] sm:$0xff]  }
   0x6   :  { %3230 = vmatprep.mubr.msk.bf16.mxu1 %vm125_vm0, %v3718_v12  ;;  %v437_v21 = vsel %vm125_vm0, %v3514_v18, 0  ;;  %v3518_v26 = vld [vmem:[%s5136_s1 + $0x70] sm:$0xff]   ;;  %v169_v27 = vsel %vm125_vm0, %v3517_v24, 0  ;;  %v3520_v30 = vld [vmem:[%s5136_s1 + $0x78] sm:$0xff]   ;;  %v172_v31 = vsel %vm125_vm0, %v3519_v28, 0  ;;  %v3523_v32 = vld [vmem:[%s5136_s1 + $0x80] sm:$0xff]  }
   0x7   :  { %v443_v29 = vsel %vm125_vm0, %v3518_v26, 0  ;;  %v446_v33 = vsel %vm125_vm0, %v3520_v30, 0  ;;  %v3524_v34 = vld [vmem:[%s5136_s1 + $0xc0] sm:$0xff]   ;;  %v731_v35 = vsel %vm125_vm0, %v3523_v32, 0  ;;  %v3782_v36 = vld [vmem:[%s5135_s0 + $0x8] sm:$0xff]   ;;  %v3796_v40 = vld [vmem:[%s5135_s0 + $0x10] sm:$0xff]  }
   0x8   :  { %v3525_v37 = vld [vmem:[%s5136_s1 + $0x88] sm:$0xff]   ;;  %v1037_v38 = vsel %vm125_vm0, %v3524_v34, 0 }
   0x9   :  { %v3526_v39 = vld [vmem:[%s5136_s1 + $0xc8] sm:$0xff]  }
   0xb   :  { %3185 = vmatpush3.bf16.xpose.msra.mxu0 %v154_v6 }
   0xc   :  { %3217 = vmatpush3.bf16.xpose.msra.mxu1 %v428_v8  ;;  %3440 = vmatprep.subr.msk.bf16.mxu0 %vm125_vm0, %v3509_v7 }
   0xd   :  { %3448 = vmatprep.subr.msk.bf16.mxu1 %vm125_vm0, %v3510_v9 }
  0x13   :  { %3187 = vmatpush3.bf16.xpose.msra.mxu0 %v157_v11 }
  0x14   :  { %3219 = vmatpush3.bf16.xpose.msra.mxu1 %v431_v13  ;;  %3441 = vmatprep.subr.msk.bf16.mxu0 %vm125_vm0, %v3511_v10 }
  0x15   :  { %3449 = vmatprep.subr.msk.bf16.mxu1 %vm125_vm0, %v3512_v14 }
  0x1b   :  { %3189 = vmatpush3.bf16.xpose.msra.mxu0 %v160_v15 }
  0x1c   :  { %3221 = vmatpush3.bf16.xpose.msra.mxu1 %v434_v17  ;;  %3442 = vmatprep.subr.msk.bf16.mxu0 %vm125_vm0, %v3513_v16 }
  0x1d   :  { %3450 = vmatprep.subr.msk.bf16.mxu1 %vm125_vm0, %v3514_v18 }
  0x23   :  { %3191 = vmatpush3.bf16.xpose.msra.mxu0 %v163_v19 }
  0x24   :  { %3223 = vmatpush3.bf16.xpose.msra.mxu1 %v437_v21  ;;  %3443 = vmatprep.subr.msk.bf16.mxu0 %vm125_vm0, %v3515_v20 }
  0x25   :  { %3451 = vmatprep.subr.msk.bf16.mxu1 %vm125_vm0, %v3516_v22 }
  0x2b   :  { %3193 = vmatpush3.bf16.xpose.msra.mxu0 %v166_v23 }
  0x2c   :  { %3225 = vmatpush3.bf16.xpose.msra.mxu1 %v440_v25  ;;  %3444 = vmatprep.subr.msk.bf16.mxu0 %vm125_vm0, %v3517_v24 }
  0x2d   :  { %3452 = vmatprep.subr.msk.bf16.mxu1 %vm125_vm0, %v3518_v26 }
  0x33   :  { %3195 = vmatpush3.bf16.xpose.msra.mxu0 %v169_v27 }
  0x34   :  { %3227 = vmatpush3.bf16.xpose.msra.mxu1 %v443_v29  ;;  %3445 = vmatprep.subr.msk.bf16.mxu0 %vm125_vm0, %v3519_v28 }
  0x35   :  { %3453 = vmatprep.subr.msk.bf16.mxu1 %vm125_vm0, %v3520_v30 }
  0x3b   :  { %3197 = vmatpush3.bf16.xpose.msra.mxu0 %v172_v31 }
  0x3c   :  { %3229 = vmatpush3.bf16.xpose.msra.mxu1 %v446_v33  ;;  %3454 = vmatprep.subr.msk.bf16.mxu0 %vm125_vm0, %v3523_v32 }
  0x3d   :  { %3462 = vmatprep.subr.msk.bf16.mxu1 %vm125_vm0, %v3524_v34 }
  0x42   :  { %3199 = vmatmul.mubr.msk.bf16.vlgmr.msra.gmra.mrb[0].mxu0 %vm125_vm0, %v3782_v36 }
  0x43   :  { %3231 = vmatmul.mubr.msk.bf16.vlgmr.msra.gmra.mrb[0].mxu1 %vm125_vm0, %v3782_v36  ;;  %3247 = vmatpush3.bf16.xpose.msra.mxu0 %v731_v35 }
  0x44   :  { %3279 = vmatpush3.bf16.xpose.msra.mxu1 %v1037_v38  ;;  %3455 = vmatprep.subr.msk.bf16.mxu0 %vm125_vm0, %v3525_v37 }
  0x45   :  { %7 = vsyncpa [#allocation3], 0  ;;  %3463 = vmatprep.subr.msk.bf16.mxu1 %vm125_vm0, %v3526_v39  ;;  %3202 = vmatprep.mubr.msk.bf16.mxu0 %vm125_vm0, %v3796_v40  ;;  %v3811_v41 = vld [vmem:[%s5135_s0 + $0x18] sm:$0xff]   ;;  %v734_v42 = vsel %vm125_vm0, %v3525_v37, 0  ;;  %v3527_v43 = vld [vmem:[%s5136_s1 + $0x90] sm:$0xff]   ;;  %v1040_v44 = vsel %vm125_vm0, %v3526_v39, 0 }
  0x46   :  { %3234 = vmatprep.mubr.msk.bf16.mxu1 %vm125_vm0, %v3796_v40  ;;  %v3528_v45 = vld [vmem:[%s5136_s1 + $0xd0] sm:$0xff]   ;;  %v3824_v46 = vld [vmem:[%s5135_s0 + $0x20] sm:$0xff]   ;;  %v3839_v47 = vld [vmem:[%s5135_s0 + $0x28] sm:$0xff]   ;;  %v737_v48 = vsel %vm125_vm0, %v3527_v43, 0  ;;  %vm2749_vm1 = vcmask 1041409   ;;  %vm2751_vm2 = vcmask 1042434  }
  0x47   :  { %v3529_v49 = vld [vmem:[%s5136_s1 + $0x98] sm:$0xff]   ;;  %v1043_v50 = vsel %vm125_vm0, %v3528_v45, 0  ;;  %v3852_v52 = vld [vmem:[%s5135_s0 + $0x30] sm:$0xff]   ;;  %v3533_v55 = vld [vmem:[%s5136_s1 + $0xa0] sm:$0xff]   ;;  %vm2753_vm3 = vcmask 1043459   ;;  %vm2755_vm4 = vcmask 1044484  }
  0x48   :  { %v3530_v51 = vld [vmem:[%s5136_s1 + $0xd8] sm:$0xff]   ;;  %v740_v54 = vsel %vm125_vm0, %v3529_v49, 0  ;;  %v3534_v57 = vld [vmem:[%s5136_s1 + $0xe0] sm:$0xff]   ;;  %v743_v58 = vsel %vm125_vm0, %v3533_v55, 0  ;;  %v3537_v59 = vld [vmem:[%s5136_s1 + $0xa8] sm:$0xff]   ;;  %vm2757_vm5 = vcmask 1045509  }
  0x49   :  { %v3867_v53 = vld [vmem:[%s5135_s0 + $0x38] sm:$0xff]   ;;  %v1046_v56 = vsel %vm125_vm0, %v3530_v51, 0  ;;  %v1049_v60 = vsel %vm125_vm0, %v3534_v57, 0  ;;  %v3538_v61 = vld [vmem:[%s5136_s1 + $0xe8] sm:$0xff]   ;;  %v746_v62 = vsel %vm125_vm0, %v3537_v59, 0  ;;  %v3541_v63 = vld [vmem:[%s5136_s1 + $0xb0] sm:$0xff]  }
  0x4a   :  { %3203 = vmatmul.mubr.msk.bf16.gmra.mrb[4].mxu0 %vm125_vm0, %v3811_v41  ;;  %v1052_v0 = vsel %vm125_vm0, %v3538_v61, 0  ;;  %v3542_v1 = vld [vmem:[%s5136_s1 + $0xf0] sm:$0xff]   ;;  %v749_v2 = vsel %vm125_vm0, %v3541_v63, 0  ;;  %v3543_v3 = vld [vmem:[%s5136_s1 + $0xb8] sm:$0xff]   ;;  %v3545_v7 = vld [vmem:[%s5136_s1 + $0x100] sm:$0xff]   ;;  %vm2759_vm6 = vcmask 1046534  }
  0x4b   :  { %3249 = vmatpush3.bf16.xpose.msra.mxu0 %v734_v42  ;;  %3235 = vmatmul.mubr.msk.bf16.gmra.mrb[4].mxu1 %vm125_vm0, %v3811_v41  ;;  %v1055_v4 = vsel %vm125_vm0, %v3542_v1, 0  ;;  %v3544_v5 = vld [vmem:[%s5136_s1 + $0xf8] sm:$0xff]   ;;  %v752_v6 = vsel %vm125_vm0, %v3543_v3, 0  ;;  %v3546_v9 = vld [vmem:[%s5136_s1 + $0x140] sm:$0xff]   ;;  %v1343_v10 = vsel %vm125_vm0, %v3545_v7, 0  ;;  %v3547_v13 = vld [vmem:[%s5136_s1 + $0x108] sm:$0xff]  }
  0x4c   :  { %3281 = vmatpush3.bf16.xpose.msra.mxu1 %v1040_v44  ;;  %3456 = vmatprep.subr.msk.bf16.mxu0 %vm125_vm0, %v3527_v43  ;;  %v1058_v8 = vsel %vm125_vm0, %v3544_v5, 0  ;;  %v1649_v11 = vsel %vm125_vm0, %v3546_v9, 0  ;;  %v3548_v14 = vld [vmem:[%s5136_s1 + $0x148] sm:$0xff]   ;;  %v1346_v15 = vsel %vm125_vm0, %v3547_v13, 0  ;;  %v3549_v17 = vld [vmem:[%s5136_s1 + $0x110] sm:$0xff]   ;;  %v3551_v21 = vld [vmem:[%s5136_s1 + $0x118] sm:$0xff]  }
  0x4d   :  { %3464 = vmatprep.subr.msk.bf16.mxu1 %vm125_vm0, %v3528_v45  ;;  %3206 = vmatprep.mubr.msk.bf16.mxu0 %vm125_vm0, %v3824_v46  ;;  %v1652_v16 = vsel %vm125_vm0, %v3548_v14, 0  ;;  %v3550_v18 = vld [vmem:[%s5136_s1 + $0x150] sm:$0xff]   ;;  %v1349_v19 = vsel %vm125_vm0, %v3549_v17, 0  ;;  %v3552_v22 = vld [vmem:[%s5136_s1 + $0x158] sm:$0xff]   ;;  %v1352_v23 = vsel %vm125_vm0, %v3551_v21, 0  ;;  %v3553_v24 = vld [vmem:[%s5136_s1 + $0x120] sm:$0xff]  }
  0x4e   :  { %3238 = vmatprep.mubr.msk.bf16.mxu1 %vm125_vm0, %v3824_v46  ;;  %v1655_v20 = vsel %vm125_vm0, %v3550_v18, 0  ;;  %v1658_v25 = vsel %vm125_vm0, %v3552_v22, 0  ;;  %v3554_v26 = vld [vmem:[%s5136_s1 + $0x160] sm:$0xff]   ;;  %v1355_v27 = vsel %vm125_vm0, %v3553_v24, 0  ;;  %v3555_v28 = vld [vmem:[%s5136_s1 + $0x128] sm:$0xff]   ;;  %v3557_v32 = vld [vmem:[%s5136_s1 + $0x130] sm:$0xff]  }
  0x4f   :  { %v1661_v29 = vsel %vm125_vm0, %v3554_v26, 0  ;;  %v3556_v30 = vld [vmem:[%s5136_s1 + $0x168] sm:$0xff]   ;;  %v1358_v31 = vsel %vm125_vm0, %v3555_v28, 0  ;;  %v3558_v34 = vld [vmem:[%s5136_s1 + $0x170] sm:$0xff]   ;;  %v1361_v35 = vsel %vm125_vm0, %v3557_v32, 0  ;;  %v3559_v37 = vld [vmem:[%s5136_s1 + $0x138] sm:$0xff]  }
  0x50   :  { %v1664_v33 = vsel %vm125_vm0, %v3556_v30, 0  ;;  %v1667_v38 = vsel %vm125_vm0, %v3558_v34, 0  ;;  %v3560_v39 = vld [vmem:[%s5136_s1 + $0x178] sm:$0xff]   ;;  %v1364_v42 = vsel %vm125_vm0, %v3559_v37, 0  ;;  %v3561_v43 = vld [vmem:[%s5136_s1 + $0x180] sm:$0xff]   ;;  %vm2761_vm7 = vcmask 1047559  }
  0x51   :  { %v1670_v44 = vsel %vm125_vm0, %v3560_v39, 0  ;;  %v3562_v45 = vld [vmem:[%s5136_s1 + $0x1c0] sm:$0xff]  }
  0x52   :  { %3207 = vmatmul.mubr.msk.bf16.gmra.mrb[8].mxu0 %vm125_vm0, %v3839_v47 }
  0x53   :  { %3251 = vmatpush3.bf16.xpose.msra.mxu0 %v737_v48  ;;  %3239 = vmatmul.mubr.msk.bf16.gmra.mrb[8].mxu1 %vm125_vm0, %v3839_v47  ;;  %v1955_v48 = vsel %vm125_vm0, %v3561_v43, 0 }
  0x54   :  { %3283 = vmatpush3.bf16.xpose.msra.mxu1 %v1043_v50  ;;  %3457 = vmatprep.subr.msk.bf16.mxu0 %vm125_vm0, %v3529_v49  ;;  %v2261_v49 = vsel %vm125_vm0, %v3562_v45, 0  ;;  %v3563_v50 = vld [vmem:[%s5136_s1 + $0x188] sm:$0xff]  }
  0x55   :  { %3465 = vmatprep.subr.msk.bf16.mxu1 %vm125_vm0, %v3530_v51  ;;  %3210 = vmatprep.mubr.msk.bf16.mxu0 %vm125_vm0, %v3852_v52  ;;  %v3564_v51 = vld [vmem:[%s5136_s1 + $0x1c8] sm:$0xff]  }
  0x56   :  { %3242 = vmatprep.mubr.msk.bf16.mxu1 %vm125_vm0, %v3852_v52 }
  0x5a   :  { %3211 = vmatmul.mubr.msk.bf16.gmra.mrb[12].mxu0 %vm125_vm0, %v3867_v53 }
  0x5b   :  { %3253 = vmatpush3.bf16.xpose.msra.mxu0 %v740_v54  ;;  %3243 = vmatmul.mubr.msk.bf16.gmra.mrb[12].mxu1 %vm125_vm0, %v3867_v53  ;;  %v1958_v54 = vsel %vm125_vm0, %v3563_v50, 0 }
  0x5c   :  { %3285 = vmatpush3.bf16.xpose.msra.mxu1 %v1046_v56  ;;  %3458 = vmatprep.subr.msk.bf16.mxu0 %vm125_vm0, %v3533_v55  ;;  %v2264_v55 = vsel %vm125_vm0, %v3564_v51, 0  ;;  %v3565_v56 = vld [vmem:[%s5136_s1 + $0x190] sm:$0xff]  }
  0x5d   :  { %3466 = vmatprep.subr.msk.bf16.mxu1 %vm125_vm0, %v3534_v57  ;;  %3262 = vmatprep.mubr.msk.bf16.mxu0 %vm125_vm0, %v3718_v12  ;;  %v3566_v57 = vld [vmem:[%s5136_s1 + $0x1d0] sm:$0xff]  }
  0x5e   :  { %3294 = vmatprep.mubr.msk.bf16.mxu1 %vm125_vm0, %v3718_v12 }
  0x63   :  { %3255 = vmatpush3.bf16.xpose.msra.mxu0 %v743_v58  ;;  %v1961_v58 = vsel %vm125_vm0, %v3565_v56, 0 }
  0x64   :  { %3287 = vmatpush3.bf16.xpose.msra.mxu1 %v1049_v60  ;;  %3459 = vmatprep.subr.msk.bf16.mxu0 %vm125_vm0, %v3537_v59  ;;  %v2267_v59 = vsel %vm125_vm0, %v3566_v57, 0  ;;  %v3567_v60 = vld [vmem:[%s5136_s1 + $0x198] sm:$0xff]  }
  0x65   :  { %3467 = vmatprep.subr.msk.bf16.mxu1 %vm125_vm0, %v3538_v61  ;;  %v3568_v61 = vld [vmem:[%s5136_s1 + $0x1d8] sm:$0xff]  }
  0x6b   :  { %3257 = vmatpush3.bf16.xpose.msra.mxu0 %v746_v62  ;;  %v1964_v62 = vsel %vm125_vm0, %v3567_v60, 0 }
  0x6c   :  { %3289 = vmatpush3.bf16.xpose.msra.mxu1 %v1052_v0  ;;  %3460 = vmatprep.subr.msk.bf16.mxu0 %vm125_vm0, %v3541_v63  ;;  %v3569_v63 = vld [vmem:[%s5136_s1 + $0x1a0] sm:$0xff]   ;;  %v2270_v0 = vsel %vm125_vm0, %v3568_v61, 0 }
  0x6d   :  { %3468 = vmatprep.subr.msk.bf16.mxu1 %vm125_vm0, %v3542_v1  ;;  %v3570_v1 = vld [vmem:[%s5136_s1 + $0x1e0] sm:$0xff]  }
  0x73   :  { %3259 = vmatpush3.bf16.xpose.msra.mxu0 %v749_v2  ;;  %v1967_v2 = vsel %vm125_vm0, %v3569_v63, 0 }
  0x74   :  { %3291 = vmatpush3.bf16.xpose.msra.mxu1 %v1055_v4  ;;  %3461 = vmatprep.subr.msk.bf16.mxu0 %vm125_vm0, %v3543_v3  ;;  %v3571_v3 = vld [vmem:[%s5136_s1 + $0x1a8] sm:$0xff]   ;;  %v2273_v4 = vsel %vm125_vm0, %v3570_v1, 0 }
  0x75   :  { %3469 = vmatprep.subr.msk.bf16.mxu1 %vm125_vm0, %v3544_v5  ;;  %v3572_v5 = vld [vmem:[%s5136_s1 + $0x1e8] sm:$0xff]  }
  0x7b   :  { %3261 = vmatpush3.bf16.xpose.msra.mxu0 %v752_v6  ;;  %v3573_v6 = vld [vmem:[%s5136_s1 + $0x1b0] sm:$0xff]  }
  0x7c   :  { %3293 = vmatpush3.bf16.xpose.msra.mxu1 %v1058_v8  ;;  %3470 = vmatprep.subr.msk.bf16.mxu0 %vm125_vm0, %v3545_v7  ;;  %v2276_v7 = vsel %vm125_vm0, %v3572_v5, 0  ;;  %v3574_v8 = vld [vmem:[%s5136_s1 + $0x1f0] sm:$0xff]  }
  0x7d   :  { %3478 = vmatprep.subr.msk.bf16.mxu1 %vm125_vm0, %v3546_v9  ;;  %v1973_v9 = vsel %vm125_vm0, %v3573_v6, 0 }
  0x82   :  { %3263 = vmatmul.mubr.msk.bf16.vlgmr.msra.gmra.mrb[16].mxu0 %vm125_vm0, %v3782_v36 }
  0x83   :  { %3295 = vmatmul.mubr.msk.bf16.vlgmr.msra.gmra.mrb[16].mxu1 %vm125_vm0, %v3782_v36  ;;  %3311 = vmatpush3.bf16.xpose.msra.mxu0 %v1343_v10  ;;  %v3575_v10 = vld [vmem:[%s5136_s1 + $0x1b8] sm:$0xff]  }
  0x84   :  { %3343 = vmatpush3.bf16.xpose.msra.mxu1 %v1649_v11  ;;  %3266 = vmatprep.mubr.msk.bf16.mxu0 %vm125_vm0, %v3796_v40  ;;  %v2279_v11 = vsel %vm125_vm0, %v3574_v8, 0 }
  0x85   :  { %3471 = vmatprep.subr.msk.bf16.mxu0 %vm125_vm0, %v3547_v13  ;;  %3479 = vmatprep.subr.msk.bf16.mxu1 %vm125_vm0, %v3548_v14  ;;  %v3576_v13 = vld [vmem:[%s5136_s1 + $0x1f8] sm:$0xff]   ;;  %v1976_v14 = vsel %vm125_vm0, %v3575_v10, 0  ;;  %s3665_s1 = smov [#allocation2]  }
  0x86   :  { %3298 = vmatprep.mubr.msk.bf16.mxu1 %vm125_vm0, %v3796_v40  ;;  %s2779_s10 = sshll.u32 %s3665_s1, 4  ;;  %s2780_s10 = int_to_ptr.vmem [resolvable:$true] %s2779_s10 }
  0x87   :  { %s3641_s11 = scalar_lea.vmem %s2780_s10, 256  ;;  %p3646_p1 = scmp.lt.s32.totalorder %s2780_s10, %s2780_s10 }
  0x88   :  { %p3642_p0 = scmp.ne.s32.totalorder %s2780_s10, %s3641_s11  ;;  %p3647_p2 = scmp.lt.s32.totalorder %s3641_s11, %s3641_s11 }
  0x8a   :  { %3267 = vmatmul.mubr.msk.bf16.gmra.mrb[20].mxu0 %vm125_vm0, %v3811_v41  ;;  %p3648_p3 = por %p3647_p2, %p3646_p1 }
  0x8b   :  { %3313 = vmatpush3.bf16.xpose.msra.mxu0 %v1346_v15  ;;  %3299 = vmatmul.mubr.msk.bf16.gmra.mrb[20].mxu1 %vm125_vm0, %v3811_v41  ;;  %v2282_v15 = vsel %vm125_vm0, %v3576_v13, 0 }
  0x8c   :  { %3345 = vmatpush3.bf16.xpose.msra.mxu1 %v1652_v16  ;;  %3270 = vmatprep.mubr.msk.bf16.mxu0 %vm125_vm0, %v3824_v46  ;;  %p3649_p4 = pnand %p3648_p3, %p3642_p0 }
  0x8d   :  { %3472 = vmatprep.subr.msk.bf16.mxu0 %vm125_vm0, %v3549_v17  ;;  %3480 = vmatprep.subr.msk.bf16.mxu1 %vm125_vm0, %v3550_v18 }
  0x8e   :  { %3302 = vmatprep.mubr.msk.bf16.mxu1 %vm125_vm0, %v3824_v46 }
  0x92   :  { %3271 = vmatmul.mubr.msk.bf16.gmra.mrb[24].mxu0 %vm125_vm0, %v3839_v47 }
  0x93   :  { %3315 = vmatpush3.bf16.xpose.msra.mxu0 %v1349_v19  ;;  %3303 = vmatmul.mubr.msk.bf16.gmra.mrb[24].mxu1 %vm125_vm0, %v3839_v47 }
  0x94   :  { %3347 = vmatpush3.bf16.xpose.msra.mxu1 %v1655_v20  ;;  %3274 = vmatprep.mubr.msk.bf16.mxu0 %vm125_vm0, %v3852_v52 }
  0x95   :  { %3473 = vmatprep.subr.msk.bf16.mxu0 %vm125_vm0, %v3551_v21  ;;  %3481 = vmatprep.subr.msk.bf16.mxu1 %vm125_vm0, %v3552_v22 }
  0x96   :  { %3306 = vmatprep.mubr.msk.bf16.mxu1 %vm125_vm0, %v3852_v52 }
  0x9a   :  { %3275 = vmatmul.mubr.msk.bf16.gmra.mrb[28].mxu0 %vm125_vm0, %v3867_v53 }
  0x9b   :  { %3317 = vmatpush3.bf16.xpose.msra.mxu0 %v1352_v23  ;;  %3307 = vmatmul.mubr.msk.bf16.gmra.mrb[28].mxu1 %vm125_vm0, %v3867_v53 }
  0x9c   :  { %3349 = vmatpush3.bf16.xpose.msra.mxu1 %v1658_v25  ;;  %3474 = vmatprep.subr.msk.bf16.mxu0 %vm125_vm0, %v3553_v24 }
  0x9d   :  { %3482 = vmatprep.subr.msk.bf16.mxu1 %vm125_vm0, %v3554_v26  ;;  %3326 = vmatprep.mubr.msk.bf16.mxu0 %vm125_vm0, %v3718_v12 }
  0x9e   :  { %3358 = vmatprep.mubr.msk.bf16.mxu1 %vm125_vm0, %v3718_v12 }
  0xa3   :  { %3319 = vmatpush3.bf16.xpose.msra.mxu0 %v1355_v27 }
  0xa4   :  { %3351 = vmatpush3.bf16.xpose.msra.mxu1 %v1661_v29  ;;  %3475 = vmatprep.subr.msk.bf16.mxu0 %vm125_vm0, %v3555_v28 }
  0xa5   :  { %3483 = vmatprep.subr.msk.bf16.mxu1 %vm125_vm0, %v3556_v30 }
  0xab   :  { %3321 = vmatpush3.bf16.xpose.msra.mxu0 %v1358_v31 }
  0xac   :  { %3353 = vmatpush3.bf16.xpose.msra.mxu1 %v1664_v33  ;;  %3476 = vmatprep.subr.msk.bf16.mxu0 %vm125_vm0, %v3557_v32 }
  0xad   :  { %3484 = vmatprep.subr.msk.bf16.mxu1 %vm125_vm0, %v3558_v34 }
  0xb3   :  { %3323 = vmatpush3.bf16.xpose.msra.mxu0 %v1361_v35 }
  0xb4   :  { %3355 = vmatpush3.bf16.xpose.msra.mxu1 %v1667_v38  ;;  %3477 = vmatprep.subr.msk.bf16.mxu0 %vm125_vm0, %v3559_v37 }
  0xb5   :  { %3485 = vmatprep.subr.msk.bf16.mxu1 %vm125_vm0, %v3560_v39 }
  0xbb   :  { %3325 = vmatpush3.bf16.xpose.msra.mxu0 %v1364_v42 }
  0xbc   :  { %3357 = vmatpush3.bf16.xpose.msra.mxu1 %v1670_v44  ;;  %3486 = vmatprep.subr.msk.bf16.mxu0 %vm125_vm0, %v3561_v43 }
  0xbd   :  { %3494 = vmatprep.subr.msk.bf16.mxu1 %vm125_vm0, %v3562_v45 }
  0xc2   :  { %3327 = vmatmul.mubr.msk.bf16.vlgmr.msra.gmra.mrb[32].mxu0 %vm125_vm0, %v3782_v36 }
  0xc3   :  { %3359 = vmatmul.mubr.msk.bf16.vlgmr.msra.gmra.mrb[32].mxu1 %vm125_vm0, %v3782_v36  ;;  %3375 = vmatpush3.bf16.xpose.msra.mxu0 %v1955_v48 }
  0xc4   :  { %3407 = vmatpush3.bf16.xpose.msra.mxu1 %v2261_v49  ;;  %3330 = vmatprep.mubr.msk.bf16.mxu0 %vm125_vm0, %v3796_v40 }
  0xc5   :  { %3487 = vmatprep.subr.msk.bf16.mxu0 %vm125_vm0, %v3563_v50  ;;  %3495 = vmatprep.subr.msk.bf16.mxu1 %vm125_vm0, %v3564_v51 }
  0xc6   :  { %3362 = vmatprep.mubr.msk.bf16.mxu1 %vm125_vm0, %v3796_v40 }
  0xca   :  { %3331 = vmatmul.mubr.msk.bf16.gmra.mrb[36].mxu0 %vm125_vm0, %v3811_v41 }
  0xcb   :  { %3377 = vmatpush3.bf16.xpose.msra.mxu0 %v1958_v54  ;;  %3363 = vmatmul.mubr.msk.bf16.gmra.mrb[36].mxu1 %vm125_vm0, %v3811_v41 }
  0xcc   :  { %3409 = vmatpush3.bf16.xpose.msra.mxu1 %v2264_v55  ;;  %3334 = vmatprep.mubr.msk.bf16.mxu0 %vm125_vm0, %v3824_v46 }
  0xcd   :  { %3488 = vmatprep.subr.msk.bf16.mxu0 %vm125_vm0, %v3565_v56  ;;  %3496 = vmatprep.subr.msk.bf16.mxu1 %vm125_vm0, %v3566_v57 }
  0xce   :  { %3366 = vmatprep.mubr.msk.bf16.mxu1 %vm125_vm0, %v3824_v46 }
  0xd2   :  { %3335 = vmatmul.mubr.msk.bf16.gmra.mrb[40].mxu0 %vm125_vm0, %v3839_v47 }
  0xd3   :  { %3379 = vmatpush3.bf16.xpose.msra.mxu0 %v1961_v58  ;;  %3367 = vmatmul.mubr.msk.bf16.gmra.mrb[40].mxu1 %vm125_vm0, %v3839_v47 }
  0xd4   :  { %3411 = vmatpush3.bf16.xpose.msra.mxu1 %v2267_v59  ;;  %3338 = vmatprep.mubr.msk.bf16.mxu0 %vm125_vm0, %v3852_v52 }
  0xd5   :  { %3489 = vmatprep.subr.msk.bf16.mxu0 %vm125_vm0, %v3567_v60  ;;  %3497 = vmatprep.subr.msk.bf16.mxu1 %vm125_vm0, %v3568_v61 }
  0xd6   :  { %3370 = vmatprep.mubr.msk.bf16.mxu1 %vm125_vm0, %v3852_v52 }
  0xda   :  { %3339 = vmatmul.mubr.msk.bf16.gmra.mrb[44].mxu0 %vm125_vm0, %v3867_v53 }
  0xdb   :  { %3381 = vmatpush3.bf16.xpose.msra.mxu0 %v1964_v62  ;;  %3371 = vmatmul.mubr.msk.bf16.gmra.mrb[44].mxu1 %vm125_vm0, %v3867_v53 }
  0xdc   :  { %3413 = vmatpush3.bf16.xpose.msra.mxu1 %v2270_v0  ;;  %3490 = vmatprep.subr.msk.bf16.mxu0 %vm125_vm0, %v3569_v63 }
  0xdd   :  { %3498 = vmatprep.subr.msk.bf16.mxu1 %vm125_vm0, %v3570_v1  ;;  %3390 = vmatprep.mubr.msk.bf16.mxu0 %vm125_vm0, %v3718_v12 }
  0xde   :  { %3422 = vmatprep.mubr.msk.bf16.mxu1 %vm125_vm0, %v3718_v12  ;;  %v1970_v12 = vsel %vm125_vm0, %v3571_v3, 0 }
  0xe3   :  { %3383 = vmatpush3.bf16.xpose.msra.mxu0 %v1967_v2 }
  0xe4   :  { %3415 = vmatpush3.bf16.xpose.msra.mxu1 %v2273_v4  ;;  %3491 = vmatprep.subr.msk.bf16.mxu0 %vm125_vm0, %v3571_v3 }
  0xe5   :  { %3499 = vmatprep.subr.msk.bf16.mxu1 %vm125_vm0, %v3572_v5 }
  0xeb   :  { %3385 = vmatpush3.bf16.xpose.msra.mxu0 %v1970_v12 }
  0xec   :  { %3417 = vmatpush3.bf16.xpose.msra.mxu1 %v2276_v7  ;;  %3492 = vmatprep.subr.msk.bf16.mxu0 %vm125_vm0, %v3573_v6 }
  0xed   :  { %3500 = vmatprep.subr.msk.bf16.mxu1 %vm125_vm0, %v3574_v8 }
  0xf3   :  { %3387 = vmatpush3.bf16.xpose.msra.mxu0 %v1973_v9 }
  0xf4   :  { %3419 = vmatpush3.bf16.xpose.msra.mxu1 %v2279_v11  ;;  %3493 = vmatprep.subr.msk.bf16.mxu0 %vm125_vm0, %v3575_v10 }
  0xf5   :  { %3501 = vmatprep.subr.msk.bf16.mxu1 %vm125_vm0, %v3576_v13 }
  0xfb   :  { %3389 = vmatpush3.bf16.xpose.msra.mxu0 %v1976_v14 }
  0xfc   :  { %3421 = vmatpush3.bf16.xpose.msra.mxu1 %v2282_v15 }
 0x102   :  { %3391 = vmatmul.mubr.msk.bf16.vlgmr.msra.gmra.mrb[48].mxu0 %vm125_vm0, %v3782_v36 }
 0x103   :  { %3423 = vmatmul.mubr.msk.bf16.vlgmr.msra.gmra.mrb[48].mxu1 %vm125_vm0, %v3782_v36  ;;  %3394 = vmatprep.mubr.msk.bf16.mxu0 %vm125_vm0, %v3796_v40 }
 0x104   :  { %3426 = vmatprep.mubr.msk.bf16.mxu1 %vm125_vm0, %v3796_v40 }
 0x10a   :  { %3395 = vmatmul.mubr.msk.bf16.gmra.mrb[52].mxu0 %vm125_vm0, %v3811_v41 }
 0x10b   :  { %3427 = vmatmul.mubr.msk.bf16.gmra.mrb[52].mxu1 %vm125_vm0, %v3811_v41  ;;  %3398 = vmatprep.mubr.msk.bf16.mxu0 %vm125_vm0, %v3824_v46 }
 0x10c   :  { %3430 = vmatprep.mubr.msk.bf16.mxu1 %vm125_vm0, %v3824_v46 }
 0x112   :  { %3399 = vmatmul.mubr.msk.bf16.gmra.mrb[56].mxu0 %vm125_vm0, %v3839_v47 }
 0x113   :  { %3431 = vmatmul.mubr.msk.bf16.gmra.mrb[56].mxu1 %vm125_vm0, %v3839_v47  ;;  %3402 = vmatprep.mubr.msk.bf16.mxu0 %vm125_vm0, %v3852_v52 }
 0x114   :  { %3434 = vmatprep.mubr.msk.bf16.mxu1 %vm125_vm0, %v3852_v52 }
 0x115   :  { %v4167_v36 = vpop.f32.mrb[0].mxu0 }
 0x116   :  { %v283_v40 = vrot.slane %v4167_v36, 4  ;;  %v4170_v41 = vpop.f32.mrb[0].mxu1  ;;  %v4172_v16 = vpop.f32.mrb[1].mxu0 }
 0x117   :  { %v557_v46 = vrot.slane %v4170_v41, 4  ;;  %v271_v47 = vrot.slane %v4172_v16, 4  ;;  %v4178_v18 = vpop.f32.mrb[1].mxu1  ;;  %v4180_v19 = vpop.f32.mrb[2].mxu0 }
 0x118   :  { %v284_v52 = vmax.f32 %v4167_v36, %v283_v40  ;;  %v545_v20 = vrot.slane %v4178_v18, 4  ;;  %v289_v22 = vrot.slane %v4180_v19, 4  ;;  %v4187_v23 = vpop.f32.mrb[2].mxu1  ;;  %v4189_v24 = vpop.f32.mrb[3].mxu0 }
 0x119   :  { %v558_v25 = vmax.f32 %v4170_v41, %v557_v46  ;;  %v272_v26 = vmax.f32 %v4172_v16, %v271_v47  ;;  %v563_v27 = vrot.slane %v4187_v23, 4  ;;  %v4196_v29 = vpop.f32.mrb[3].mxu1  ;;  %v277_v33 = vrot.slane %v4189_v24, 4 }
 0x11a   :  { %v285_v30 = vrot.slane %v284_v52, 2  ;;  %v546_v31 = vmax.f32 %v4178_v18, %v545_v20  ;;  %v290_v32 = vmax.f32 %v4180_v19, %v289_v22  ;;  %3403 = vmatmul.mubr.msk.bf16.gmra.mrb[60].mxu0 %vm125_vm0, %v3867_v53  ;;  %v551_v38 = vrot.slane %v4196_v29, 4 }
 0x11b   :  { %v559_v34 = vrot.slane %v558_v25, 2  ;;  %v273_v35 = vrot.slane %v272_v26, 2  ;;  %v564_v37 = vmax.f32 %v4187_v23, %v563_v27  ;;  %3435 = vmatmul.mubr.msk.bf16.gmra.mrb[60].mxu1 %vm125_vm0, %v3867_v53  ;;  %v278_v44 = vmax.f32 %v4189_v24, %v277_v33 }
 0x11c   :  { %v286_v39 = vmax.f32 %v284_v52, %v285_v30  ;;  %v547_v42 = vrot.slane %v546_v31, 2  ;;  %v291_v43 = vrot.slane %v290_v32, 2  ;;  %v552_v50 = vmax.f32 %v4196_v29, %v551_v38 }
 0x11d   :  { %v560_v45 = vmax.f32 %v558_v25, %v559_v34  ;;  %v274_v48 = vmax.f32 %v272_v26, %v273_v35  ;;  %v565_v49 = vrot.slane %v564_v37, 2  ;;  %v4209_v51 = vpop.f32.mrb[4].mxu0  ;;  %v279_v57 = vrot.slane %v278_v44, 2 }
 0x11e   :  { %v287_v54 = vrot.slane %v286_v39, 1  ;;  %v548_v55 = vmax.f32 %v546_v31, %v547_v42  ;;  %v292_v56 = vmax.f32 %v290_v32, %v291_v43  ;;  %v4211_v58 = vpop.f32.mrb[4].mxu1  ;;  %v4213_v59 = vpop.f32.mrb[5].mxu0  ;;  %v553_v62 = vrot.slane %v552_v50, 2 }
 0x11f   :  { %v561_v53 = vrot.slane %v560_v45, 1  ;;  %v275_v60 = vrot.slane %v274_v48, 1  ;;  %v566_v61 = vmax.f32 %v564_v37, %v565_v49  ;;  %v4215_v63 = vpop.f32.mrb[5].mxu1  ;;  %v4217_v0 = vpop.f32.mrb[6].mxu0  ;;  %v280_v4 = vmax.f32 %v278_v44, %v279_v57 }
 0x120   :  { %v288_v1 = vmax.f32 %v286_v39, %v287_v54  ;;  %v549_v2 = vrot.slane %v548_v55, 1  ;;  %v293_v3 = vrot.slane %v292_v56, 1  ;;  %v4219_v5 = vpop.f32.mrb[6].mxu1  ;;  %v4221_v12 = vpop.f32.mrb[7].mxu0  ;;  %v554_v9 = vmax.f32 %v552_v50, %v553_v62 }
 0x121   :  { %v562_v6 = vmax.f32 %v560_v45, %v561_v53  ;;  %v276_v7 = vmax.f32 %v274_v48, %v275_v60  ;;  %v567_v8 = vrot.slane %v566_v61, 1  ;;  %v4223_v10 = vpop.f32.mrb[7].mxu1  ;;  %v281_v14 = vrot.slane %v280_v4, 1 }
 0x122   :  { %v550_v11 = vmax.f32 %v548_v55, %v549_v2  ;;  %v294_v13 = vmax.f32 %v292_v56, %v293_v3  ;;  %v555_v47 = vrot.slane %v554_v9, 1  ;;  %v307_v52 = vrot.slane %v4209_v51, 4 }
 0x123   :  { %v4227_v40 = vadd.f32 %v562_v6, %v288_v1  ;;  %v568_v46 = vmax.f32 %v566_v61, %v567_v8  ;;  %v282_v22 = vmax.f32 %v280_v4, %v281_v14  ;;  %v581_v25 = vrot.slane %v4211_v58, 4 }
 0x124   :  { %v4230_v20 = vadd.f32 %v550_v11, %v276_v7  ;;  %v556_v30 = vmax.f32 %v554_v9, %v555_v47  ;;  %v308_v31 = vmax.f32 %v4209_v51, %v307_v52  ;;  %v295_v32 = vrot.slane %v4213_v59, 4 }
 0x125   :  { %v4235_v27 = vadd.f32 %v568_v46, %v294_v13  ;;  %v4239_v33 = vpop.f32.mrb[8].mxu0  ;;  %v582_v34 = vmax.f32 %v4211_v58, %v581_v25  ;;  %v569_v35 = vrot.slane %v4215_v63, 4  ;;  %v313_v38 = vrot.slane %v4217_v0, 4 }
 0x126   :  { %v4246_v39 = vpop.f32.mrb[8].mxu1  ;;  %v4248_v42 = vpop.f32.mrb[9].mxu0  ;;  %v4250_v43 = vadd.f32 %v556_v30, %v282_v22  ;;  %v309_v44 = vrot.slane %v308_v31, 2  ;;  %v296_v45 = vmax.f32 %v4213_v59, %v295_v32  ;;  %v587_v48 = vrot.slane %v4219_v5, 4 }
 0x127   :  { %5181 = vst [vmem:[#allocation5_spill] sm:$0xff] %v4248_v42  ;;  %v4254_v49 = vpop.f32.mrb[9].mxu1  ;;  %v4256_v50 = vpop.f32.mrb[10].mxu0  ;;  %v583_v54 = vrot.slane %v582_v34, 2  ;;  %v570_v55 = vmax.f32 %v4215_v63, %v569_v35  ;;  %v314_v56 = vmax.f32 %v4217_v0, %v313_v38  ;;  %v301_v2 = vrot.slane %v4221_v12, 4 }
 0x128   :  { %5182 = vst [vmem:[#allocation6_spill] sm:$0xff] %v4254_v49  ;;  %5183 = vst [vmem:[#allocation7_spill] sm:$0xff] %v4256_v50  ;;  %v4262_v53 = vpop.f32.mrb[10].mxu1  ;;  %v4264_v60 = vpop.f32.mrb[11].mxu0  ;;  %v310_v61 = vmax.f32 %v308_v31, %v309_v44  ;;  %v297_v62 = vrot.slane %v296_v45, 2  ;;  %v588_v1 = vmax.f32 %v4219_v5, %v587_v48  ;;  %v575_v8 = vrot.slane %v4223_v10, 4 }
 0x129   :  { %5184 = vst [vmem:[#allocation8_spill] sm:$0xff] %v4262_v53  ;;  %v4268_v3 = vpop.f32.mrb[11].mxu1  ;;  %v584_v4 = vmax.f32 %v582_v34, %v583_v54  ;;  %v571_v6 = vrot.slane %v570_v55, 2  ;;  %v315_v7 = vrot.slane %v314_v56, 2  ;;  %v302_v14 = vmax.f32 %v4221_v12, %v301_v2 }
 0x12a   :  { %v311_v9 = vrot.slane %v310_v61, 1  ;;  %v298_v11 = vmax.f32 %v296_v45, %v297_v62  ;;  %v589_v13 = vrot.slane %v588_v1, 2  ;;  %v576_v22 = vmax.f32 %v4223_v10, %v575_v8 }
 0x12b   :  { %v585_v46 = vrot.slane %v584_v4, 1  ;;  %v572_v47 = vmax.f32 %v570_v55, %v571_v6  ;;  %v316_v52 = vmax.f32 %v314_v56, %v315_v7  ;;  %v303_v32 = vrot.slane %v302_v14, 2 }
 0x12c   :  { %v312_v25 = vmax.f32 %v310_v61, %v311_v9  ;;  %v299_v30 = vrot.slane %v298_v11, 1  ;;  %v590_v31 = vmax.f32 %v588_v1, %v589_v13  ;;  %v577_v48 = vrot.slane %v576_v22, 2 }
 0x12d   :  { %v4273_v35 = vpop.f32.mrb[12].mxu0  ;;  %v586_v34 = vmax.f32 %v584_v4, %v585_v46  ;;  %v573_v38 = vrot.slane %v572_v47, 1  ;;  %v317_v44 = vrot.slane %v316_v52, 1  ;;  %v304_v55 = vmax.f32 %v302_v14, %v303_v32 }
 0x12e   :  { %v4275_v54 = vpop.f32.mrb[12].mxu1  ;;  %v4277_v45 = vpop.f32.mrb[13].mxu0  ;;  %v300_v62 = vmax.f32 %v298_v11, %v299_v30  ;;  %v591_v2 = vrot.slane %v590_v31, 1  ;;  %v578_v8 = vmax.f32 %v576_v22, %v577_v48  ;;  %v331_v14 = vrot.slane %v4239_v33, 4 }
 0x12f   :  { %5185 = vst [vmem:[#allocation9_spill] sm:$0xff] %v4277_v45  ;;  %v4281_v61 = vpop.f32.mrb[13].mxu1  ;;  %v4283_v1 = vpop.f32.mrb[14].mxu0  ;;  %v4285_v6 = vadd.f32 %v586_v34, %v312_v25  ;;  %v574_v4 = vmax.f32 %v572_v47, %v573_v38  ;;  %v318_v7 = vmax.f32 %v316_v52, %v317_v44  ;;  %v305_v11 = vrot.slane %v304_v55, 1 }
 0x130   :  { %5186 = vst [vmem:[#allocation10_spill] sm:$0xff] %v4281_v61  ;;  %5187 = vst [vmem:[#allocation11_spill] sm:$0xff] %v4283_v1  ;;  %v4287_v9 = vpop.f32.mrb[14].mxu1  ;;  %v4289_v13 = vpop.f32.mrb[15].mxu0  ;;  %v592_v46 = vmax.f32 %v590_v31, %v591_v2  ;;  %v605_v30 = vrot.slane %v4246_v39, 4  ;;  %v579_v57 = vrot.slane %v578_v8, 1  ;;  %v332_v31 = vmax.f32 %v4239_v33, %v331_v14 }
 0x131   :  { %5188 = vst [vmem:[#allocation12_spill] sm:$0xff] %v4287_v9  ;;  %v4293_v32 = vpop.f32.mrb[15].mxu1  ;;  %v4295_v56 = vadd.f32 %v574_v4, %v300_v62  ;;  %v319_v52 = vrot.slane %v4248_v42, 4  ;;  %v306_v25 = vmax.f32 %v304_v55, %v305_v11  ;;  %v593_v48 = vrot.slane %v4254_v49, 4 }
 0x132   :  { %v4300_v22 = vadd.f32 %v592_v46, %v318_v7  ;;  %v606_v34 = vmax.f32 %v4246_v39, %v605_v30  ;;  %v580_v38 = vmax.f32 %v578_v8, %v579_v57  ;;  %v333_v2 = vrot.slane %v332_v31, 2 }
 0x133   :  { %v320_v44 = vmax.f32 %v4248_v42, %v319_v52  ;;  %v337_v47 = vrot.slane %v4256_v50, 4  ;;  %v611_v7 = vrot.slane %v4262_v53, 4  ;;  %v594_v11 = vmax.f32 %v4254_v49, %v593_v48 }
 0x134   :  { %v607_v4 = vrot.slane %v606_v34, 2  ;;  %v4310_v46 = vadd.f32 %v580_v38, %v306_v25  ;;  %v334_v8 = vmax.f32 %v332_v31, %v333_v2  ;;  %v325_v26 = vrot.slane %v4264_v60, 4 }
 0x135   :  { %v321_v55 = vrot.slane %v320_v44, 2  ;;  %v338_v30 = vmax.f32 %v4256_v50, %v337_v47  ;;  %v612_v52 = vmax.f32 %v4262_v53, %v611_v7  ;;  %v595_v37 = vrot.slane %v594_v11, 2 }
 0x136   :  { %5189 = vst [vmem:[#allocation13_spill] sm:$0xff] %v4310_v46  ;;  %v608_v14 = vmax.f32 %v606_v34, %v607_v4  ;;  %v599_v15 = vrot.slane %v4268_v3, 4  ;;  %v335_v25 = vrot.slane %v334_v8, 1  ;;  %v326_v57 = vmax.f32 %v4264_v60, %v325_v26 }
 0x137   :  { %v322_v62 = vmax.f32 %v320_v44, %v321_v55  ;;  %v339_v28 = vrot.slane %v338_v30, 2  ;;  %v613_v21 = vrot.slane %v612_v52, 2  ;;  %v596_v17 = vmax.f32 %v594_v11, %v595_v37 }
 0x138   :  { %v609_v38 = vrot.slane %v608_v14, 1  ;;  %v600_v31 = vmax.f32 %v4268_v3, %v599_v15  ;;  %v336_v34 = vmax.f32 %v334_v8, %v335_v25  ;;  %v327_v55 = vrot.slane %v326_v57, 2 }
 0x139   :  { %v323_v48 = vrot.slane %v322_v62, 1  ;;  %v340_v2 = vmax.f32 %v338_v30, %v339_v28  ;;  %v614_v4 = vmax.f32 %v612_v52, %v613_v21  ;;  %v597_v7 = vrot.slane %v596_v17, 1 }
 0x13a   :  { %v610_v47 = vmax.f32 %v608_v14, %v609_v38  ;;  %v601_v53 = vrot.slane %v600_v31, 2  ;;  %v328_v11 = vmax.f32 %v326_v57, %v327_v55  ;;  %v355_v15 = vrot.slane %v4273_v35, 4 }
 0x13b   :  { %v324_v44 = vmax.f32 %v322_v62, %v323_v48  ;;  %v341_v49 = vrot.slane %v340_v2, 1  ;;  %v615_v42 = vrot.slane %v614_v4, 1  ;;  %v598_v37 = vmax.f32 %v596_v17, %v597_v7 }
 0x13c   :  { %v4321_v50 = vadd.f32 %v610_v47, %v336_v34  ;;  %v602_v26 = vmax.f32 %v600_v31, %v601_v53  ;;  %v629_v21 = vrot.slane %v4275_v54, 4  ;;  %v329_v30 = vrot.slane %v328_v11, 1 }
 0x13d   :  { %v342_v8 = vmax.f32 %v340_v2, %v341_v49  ;;  %v616_v14 = vmax.f32 %v614_v4, %v615_v42  ;;  %v4329_v62 = vadd.f32 %v598_v37, %v324_v44  ;;  %v356_v25 = vmax.f32 %v4273_v35, %v355_v15 }
 0x13e   :  { %v603_v52 = vrot.slane %v602_v26, 1  ;;  %v630_v17 = vmax.f32 %v4275_v54, %v629_v21  ;;  %v343_v53 = vrot.slane %v4277_v45, 4  ;;  %v617_v49 = vrot.slane %v4281_v61, 4 }
 0x13f   :  { %v4332_v38 = vadd.f32 %v616_v14, %v342_v8  ;;  %v330_v42 = vmax.f32 %v328_v11, %v329_v30  ;;  %v357_v48 = vrot.slane %v356_v25, 2  ;;  %v361_v4 = vrot.slane %v4283_v1, 4 }
 0x140   :  { %v604_v57 = vmax.f32 %v602_v26, %v603_v52  ;;  %v631_v34 = vrot.slane %v630_v17, 2  ;;  %v344_v47 = vmax.f32 %v4277_v45, %v343_v53  ;;  %v618_v2 = vmax.f32 %v4281_v61, %v617_v49 }
 0x141   :  { %v358_v7 = vmax.f32 %v356_v25, %v357_v48  ;;  %v635_v55 = vrot.slane %v4287_v9, 4  ;;  %v362_v8 = vmax.f32 %v4283_v1, %v361_v4  ;;  %v349_v30 = vrot.slane %v4289_v13, 4 }
 0x142   :  { %v4342_v44 = vadd.f32 %v604_v57, %v330_v42  ;;  %v632_v11 = vmax.f32 %v630_v17, %v631_v34  ;;  %v345_v26 = vrot.slane %v344_v47, 2  ;;  %v619_v15 = vrot.slane %v618_v2, 2 }
 0x143   :  { %v359_v14 = vrot.slane %v358_v7, 1  ;;  %v636_v21 = vmax.f32 %v4287_v9, %v635_v55  ;;  %v623_v52 = vrot.slane %v4293_v32, 4  ;;  %v363_v42 = vrot.slane %v362_v8, 2 }
 0x144   :  { %v633_v53 = vrot.slane %v632_v11, 1  ;;  %v346_v49 = vmax.f32 %v344_v47, %v345_v26  ;;  %v620_v25 = vmax.f32 %v618_v2, %v619_v15  ;;  %v350_v37 = vmax.f32 %v4289_v13, %v349_v30 }
 0x145   :  { %v360_v57 = vmax.f32 %v358_v7, %v359_v14  ;;  %v637_v48 = vrot.slane %v636_v21, 2  ;;  %v624_v17 = vmax.f32 %v4293_v32, %v623_v52  ;;  %v364_v28 = vmax.f32 %v362_v8, %v363_v42 }
 0x146   :  { %v634_v34 = vmax.f32 %v632_v11, %v633_v53  ;;  %v347_v31 = vrot.slane %v346_v49, 1  ;;  %v621_v4 = vrot.slane %v620_v25, 1  ;;  %v351_v55 = vrot.slane %v350_v37, 2 }
 0x147   :  { %v638_v46 = vmax.f32 %v636_v21, %v637_v48  ;;  %v625_v9 = vrot.slane %v624_v17, 2  ;;  %v365_v7 = vrot.slane %v364_v28, 1 }
 0x148   :  { %v4355_v61 = vadd.f32 %v634_v34, %v360_v57  ;;  %v348_v47 = vmax.f32 %v346_v49, %v347_v31  ;;  %v622_v2 = vmax.f32 %v620_v25, %v621_v4  ;;  %v352_v15 = vmax.f32 %v350_v37, %v351_v55 }
 0x149   :  { %v639_v26 = vrot.slane %v638_v46, 1  ;;  %v626_v14 = vmax.f32 %v624_v17, %v625_v9  ;;  %v366_v11 = vmax.f32 %v364_v28, %v365_v7  ;;  %v5193_v31 = vmax.f32 %v4167_v36, %v4170_v41 }
 0x14a   :  { %v4357_v30 = vadd.f32 %v622_v2, %v348_v47  ;;  %v353_v53 = vrot.slane %v352_v15, 1  ;;  %v5196_v25 = vmax.f32 %v4172_v16, %v4178_v18  ;;  %v5200_v18 = vmax.f32 %v4180_v19, %v4187_v23 }
 0x14b   :  { %v640_v52 = vmax.f32 %v638_v46, %v639_v26  ;;  %v627_v8 = vrot.slane %v626_v14, 1 }
 0x14c   :  { %5190 = vst [vmem:[#allocation14_spill] sm:$0xff] %v4357_v30  ;;  %v354_v42 = vmax.f32 %v352_v15, %v353_v53 }
 0x14d   :  { %v4359_v21 = vadd.f32 %v640_v52, %v366_v11  ;;  %v628_v48 = vmax.f32 %v626_v14, %v627_v8 }
 0x14f   :  { %5191 = vst [vmem:[#allocation15_spill] sm:$0xff] %v4359_v21  ;;  %v4361_v45 = vadd.f32 %v628_v48, %v354_v42 }
 0x151   :  { %5192 = vst [vmem:[#allocation16_spill] sm:$0xff] %v4361_v45 }
 0x155   :  { %v3264_v57 = vpop.f32.mrb[16].mxu0 }
 0x156   :  { %v863_v34 = vrot.slane %v3264_v57, 4  ;;  %v4366_v49 = vmax.f32 %v5193_v31, %v3264_v57  ;;  %v4368_v9 = vpop.f32.mrb[16].mxu1  ;;  %v788_v37 = vpop.f32.mrb[17].mxu0 }
 0x157   :  { %5195 = vst [vmem:[#allocation18_spill] sm:$0xff] %v4368_v9  ;;  %v1169_v46 = vrot.slane %v4368_v9, 4  ;;  %v851_v28 = vrot.slane %v788_v37, 4  ;;  %v4374_v17 = vmax.f32 %v5196_v25, %v788_v37  ;;  %v4376_v4 = vpop.f32.mrb[17].mxu1  ;;  %v3265_v55 = vpop.f32.mrb[18].mxu0 }
 0x158   :  { %5194 = vst [vmem:[#allocation17_spill] sm:$0xff] %v4366_v49  ;;  %5198 = vst [vmem:[#allocation20_spill] sm:$0xff] %v4376_v4  ;;  %v864_v47 = vmax.f32 %v3264_v57, %v863_v34  ;;  %v1157_v41 = vrot.slane %v4376_v4, 4  ;;  %v869_v2 = vrot.slane %v3265_v55, 4  ;;  %v4381_v7 = vpop.f32.mrb[18].mxu1  ;;  %v791_v26 = vpop.f32.mrb[19].mxu0  ;;  %v4389_v11 = vmax.f32 %v5200_v18, %v3265_v55 }
 0x159   :  { %5197 = vst [vmem:[#allocation19_spill] sm:$0xff] %v4374_v17  ;;  %5199 = vst [vmem:[#allocation21_spill] sm:$0xff] %v4381_v7  ;;  %v1170_v15 = vmax.f32 %v4368_v9, %v1169_v46  ;;  %v852_v14 = vmax.f32 %v788_v37, %v851_v28  ;;  %v4391_v52 = vpop.f32.mrb[19].mxu1  ;;  %v1175_v48 = vrot.slane %v4381_v7, 4  ;;  %v857_v37 = vrot.slane %v791_v26, 4 }
 0x15a   :  { %5201 = vst [vmem:[#allocation22_spill] sm:$0xff] %v4389_v11  ;;  %v865_v53 = vrot.slane %v864_v47, 2  ;;  %v1158_v8 = vmax.f32 %v4376_v4, %v1157_v41  ;;  %v870_v42 = vmax.f32 %v3265_v55, %v869_v2  ;;  %v5202_v41 = vmax.f32 %v4189_v24, %v4196_v29 }
 0x15b   :  { %v1171_v57 = vrot.slane %v1170_v15, 2  ;;  %v853_v34 = vrot.slane %v852_v14, 2  ;;  %v1176_v19 = vmax.f32 %v4381_v7, %v1175_v48  ;;  %v858_v16 = vmax.f32 %v791_v26, %v857_v37 }
 0x15c   :  { %v866_v46 = vmax.f32 %v864_v47, %v865_v53  ;;  %v1159_v28 = vrot.slane %v1158_v8, 2  ;;  %v871_v25 = vrot.slane %v870_v42, 2  ;;  %v4401_v55 = vmax.f32 %v5202_v41, %v791_v26 }
 0x15d   :  { %v1172_v23 = vmax.f32 %v1170_v15, %v1171_v57  ;;  %v854_v18 = vmax.f32 %v852_v14, %v853_v34  ;;  %v3268_v2 = vpop.f32.mrb[20].mxu0  ;;  %v1177_v17 = vrot.slane %v1176_v19, 2  ;;  %v859_v9 = vrot.slane %v858_v16, 2 }
 0x15e   :  { %v867_v36 = vrot.slane %v866_v46, 1  ;;  %v1160_v1 = vmax.f32 %v1158_v8, %v1159_v28  ;;  %v872_v4 = vmax.f32 %v870_v42, %v871_v25  ;;  %v804_v31 = vpop.f32.mrb[21].mxu0  ;;  %v4403_v11 = vpop.f32.mrb[20].mxu1  ;;  %v1163_v15 = vrot.slane %v4391_v52, 4 }
 0x15f   :  { %v1173_v47 = vrot.slane %v1172_v23, 1  ;;  %v855_v53 = vrot.slane %v854_v18, 1  ;;  %v3269_v14 = vpop.f32.mrb[22].mxu0  ;;  %v4406_v48 = vpop.f32.mrb[21].mxu1  ;;  %v1178_v26 = vmax.f32 %v1176_v19, %v1177_v17  ;;  %v860_v28 = vmax.f32 %v858_v16, %v859_v9 }
 0x160   :  { %5203 = vst [vmem:[#allocation23_spill] sm:$0xff] %v4406_v48  ;;  %v868_v57 = vmax.f32 %v866_v46, %v867_v36  ;;  %v1161_v24 = vrot.slane %v1160_v1, 1  ;;  %v873_v29 = vrot.slane %v872_v4, 1  ;;  %v807_v34 = vpop.f32.mrb[23].mxu0  ;;  %v4408_v37 = vpop.f32.mrb[22].mxu1  ;;  %v1164_v25 = vmax.f32 %v4391_v52, %v1163_v15 }
 0x161   :  { %5204 = vst [vmem:[#allocation24_spill] sm:$0xff] %v4408_v37  ;;  %v1174_v8 = vmax.f32 %v1172_v23, %v1173_v47  ;;  %v856_v42 = vmax.f32 %v854_v18, %v855_v53  ;;  %v4411_v41 = vpop.f32.mrb[23].mxu1  ;;  %v1179_v21 = vrot.slane %v1178_v26, 1  ;;  %v861_v46 = vrot.slane %v860_v28, 1 }
 0x162   :  { %v965_v7 = vadd.f32 %v868_v57, %v4227_v40  ;;  %v1162_v49 = vmax.f32 %v1160_v1, %v1161_v24  ;;  %v874_v45 = vmax.f32 %v872_v4, %v873_v29  ;;  %v1165_v30 = vrot.slane %v1164_v25, 2 }
 0x163   :  { %v963_v36 = vadd.f32 %v856_v42, %v4230_v20  ;;  %v1180_v16 = vmax.f32 %v1178_v26, %v1179_v21  ;;  %v887_v23 = vrot.slane %v3268_v2, 4  ;;  %v862_v47 = vmax.f32 %v860_v28, %v861_v46 }
 0x164   :  { %v4417_v19 = vadd.f32 %v1174_v8, %v965_v7  ;;  %v966_v9 = vadd.f32 %v874_v45, %v4235_v27  ;;  %v1166_v40 = vmax.f32 %v1164_v25, %v1165_v30  ;;  %v5205_v1 = vmax.f32 %v4209_v51, %v4211_v58 }
 0x165   :  { %v4420_v18 = vadd.f32 %v1162_v49, %v963_v36  ;;  %v4427_v20 = vpop.f32.mrb[24].mxu0  ;;  %v888_v15 = vmax.f32 %v3268_v2, %v887_v23  ;;  %v875_v7 = vrot.slane %v804_v31, 4  ;;  %v5206_v27 = vmax.f32 %v4213_v59, %v4215_v63 }
 0x166   :  { %v4425_v4 = vmax.f32 %v5205_v1, %v3268_v2  ;;  %v4429_v53 = vadd.f32 %v1180_v16, %v966_v9  ;;  %v4436_v21 = vpop.f32.mrb[25].mxu0  ;;  %v4438_v49 = vpop.f32.mrb[24].mxu1  ;;  %v964_v30 = vadd.f32 %v862_v47, %v4250_v43  ;;  %v1167_v51 = vrot.slane %v1166_v40, 1 }
 0x167   :  { %v4434_v45 = vmax.f32 %v5206_v27, %v804_v31  ;;  %v893_v58 = vrot.slane %v3269_v14, 4  ;;  %v5207_v57 = vmax.f32 %v4217_v0, %v4219_v5  ;;  %v4446_v2 = vpop.f32.mrb[26].mxu0  ;;  %v4448_v29 = vpop.f32.mrb[25].mxu1  ;;  %v889_v59 = vrot.slane %v888_v15, 2 }
 0x168   :  { %v876_v63 = vmax.f32 %v804_v31, %v875_v7  ;;  %v1193_v26 = vrot.slane %v4403_v11, 4  ;;  %v4453_v42 = vpop.f32.mrb[27].mxu0  ;;  %v4455_v43 = vpop.f32.mrb[26].mxu1  ;;  %v1168_v28 = vmax.f32 %v1166_v40, %v1167_v51  ;;  %v881_v0 = vrot.slane %v807_v34, 4 }
 0x169   :  { %v4444_v24 = vmax.f32 %v5207_v57, %v3269_v14  ;;  %v894_v25 = vmax.f32 %v3269_v14, %v893_v58  ;;  %v5209_v5 = vmax.f32 %v4221_v12, %v4223_v10  ;;  %v4462_v46 = vpop.f32.mrb[27].mxu1  ;;  %v890_v31 = vmax.f32 %v888_v15, %v889_v59 }
 0x16a   :  { %v877_v9 = vrot.slane %v876_v63, 2  ;;  %v1194_v16 = vmax.f32 %v4403_v11, %v1193_v26  ;;  %v1181_v23 = vrot.slane %v4406_v48, 4  ;;  %v4466_v47 = vadd.f32 %v1168_v28, %v964_v30 }
 0x16b   :  { %5208 = vst [vmem:[#allocation25_spill] sm:$0xff] %v4444_v24  ;;  %v4460_v36 = vmax.f32 %v5209_v5, %v807_v34  ;;  %v895_v1 = vrot.slane %v894_v25, 2  ;;  %v882_v7 = vmax.f32 %v807_v34, %v881_v0  ;;  %v891_v40 = vrot.slane %v890_v31, 1 }
 0x16c   :  { %5210 = vst [vmem:[#allocation26_spill] sm:$0xff] %v4466_v47  ;;  %v878_v27 = vmax.f32 %v876_v63, %v877_v9  ;;  %v1195_v12 = vrot.slane %v1194_v16, 2  ;;  %v1182_v10 = vmax.f32 %v4406_v48, %v1181_v23  ;;  %v1199_v15 = vrot.slane %v4408_v37, 4 }
 0x16d   :  { %v896_v51 = vmax.f32 %v894_v25, %v895_v1  ;;  %v883_v58 = vrot.slane %v882_v7, 2  ;;  %v4474_v59 = vpop.f32.mrb[28].mxu0  ;;  %v892_v30 = vmax.f32 %v890_v31, %v891_v40  ;;  %v1187_v23 = vrot.slane %v4411_v41, 4 }
 0x16e   :  { %v879_v26 = vrot.slane %v878_v27, 1  ;;  %v1196_v34 = vmax.f32 %v1194_v16, %v1195_v12  ;;  %v1183_v28 = vrot.slane %v1182_v10, 2  ;;  %v4476_v0 = vpop.f32.mrb[29].mxu0  ;;  %v4478_v5 = vpop.f32.mrb[28].mxu1  ;;  %v1200_v25 = vmax.f32 %v4408_v37, %v1199_v15 }
 0x16f   :  { %v897_v63 = vrot.slane %v896_v51, 1  ;;  %v884_v9 = vmax.f32 %v882_v7, %v883_v58  ;;  %v4482_v1 = vpop.f32.mrb[30].mxu0  ;;  %v4484_v14 = vpop.f32.mrb[29].mxu1  ;;  %v969_v57 = vadd.f32 %v892_v30, %v4285_v6  ;;  %v1188_v58 = vmax.f32 %v4411_v41, %v1187_v23 }
 0x170   :  { %v880_v31 = vmax.f32 %v878_v27, %v879_v26  ;;  %v1197_v40 = vrot.slane %v1196_v34, 1  ;;  %v1184_v16 = vmax.f32 %v1182_v10, %v1183_v28  ;;  %v4487_v12 = vpop.f32.mrb[31].mxu0  ;;  %v4489_v8 = vpop.f32.mrb[30].mxu1  ;;  %v1201_v7 = vrot.slane %v1200_v25, 2 }
 0x171   :  { %v898_v17 = vmax.f32 %v896_v51, %v897_v63  ;;  %v885_v47 = vrot.slane %v884_v9, 1  ;;  %v4492_v15 = vpop.f32.mrb[31].mxu1  ;;  %v1189_v26 = vrot.slane %v1188_v58, 2  ;;  %v911_v63 = vrot.slane %v4427_v20, 4 }
 0x172   :  { %5211 = vst [vmem:[#allocation27_spill] sm:$0xff] %v4492_v15  ;;  %v967_v37 = vadd.f32 %v880_v31, %v4295_v56  ;;  %v1198_v24 = vmax.f32 %v1196_v34, %v1197_v40  ;;  %v1185_v48 = vrot.slane %v1184_v16, 1  ;;  %v1202_v30 = vmax.f32 %v1200_v25, %v1201_v7  ;;  %v5213_v34 = vld [vmem:[#allocation13_spill] sm:$0xff]  ;;  %v5217_v7 = vld [vmem:[#allocation7_spill] sm:$0xff] }
 0x173   :  { %v970_v27 = vadd.f32 %v898_v17, %v4300_v22  ;;  %v886_v10 = vmax.f32 %v884_v9, %v885_v47  ;;  %v5212_v23 = vmax.f32 %v4239_v33, %v4246_v39  ;;  %v1190_v6 = vmax.f32 %v1188_v58, %v1189_v26  ;;  %v5215_v47 = vld [vmem:[#allocation6_spill] sm:$0xff]  ;;  %v5218_v58 = vld [vmem:[#allocation8_spill] sm:$0xff] }
 0x174   :  { %v4498_v28 = vadd.f32 %v1198_v24, %v969_v57  ;;  %v1186_v51 = vmax.f32 %v1184_v16, %v1185_v48  ;;  %v1203_v40 = vrot.slane %v1202_v30, 1  ;;  %v899_v22 = vrot.slane %v4436_v21, 4  ;;  %v5214_v48 = vld [vmem:[#allocation5_spill] sm:$0xff] }
 0x175   :  { %v4505_v56 = vmax.f32 %v5212_v23, %v4427_v20  ;;  %v968_v31 = vadd.f32 %v886_v10, %v5213_v34  ;;  %v912_v24 = vmax.f32 %v4427_v20, %v911_v63  ;;  %v5216_v57 = vmax.f32 %v5214_v48, %v5215_v47 }
 0x176   :  { %v4509_v17 = vadd.f32 %v1186_v51, %v967_v37  ;;  %v917_v33 = vrot.slane %v4446_v2, 4  ;;  %v1204_v39 = vmax.f32 %v1202_v30, %v1203_v40  ;;  %v1191_v25 = vrot.slane %v1190_v6, 1 }
 0x177   :  { %v4516_v9 = vmax.f32 %v5216_v57, %v4436_v21  ;;  %v900_v16 = vmax.f32 %v4436_v21, %v899_v22  ;;  %v5219_v10 = vmax.f32 %v5217_v7, %v5218_v58  ;;  %v913_v26 = vrot.slane %v912_v24, 2 }
 0x178   :  { %v918_v20 = vmax.f32 %v4446_v2, %v917_v33  ;;  %v1217_v51 = vrot.slane %v4438_v49, 4  ;;  %v4530_v23 = vadd.f32 %v1204_v39, %v970_v27  ;;  %v1192_v30 = vmax.f32 %v1190_v6, %v1191_v25 }
 0x179   :  { %v4524_v37 = vmax.f32 %v5219_v10, %v4446_v2  ;;  %v901_v34 = vrot.slane %v900_v16, 2  ;;  %v905_v21 = vrot.slane %v4453_v42, 4  ;;  %v914_v40 = vmax.f32 %v912_v24, %v913_v26 }
 0x17a   :  { %v919_v22 = vrot.slane %v918_v20, 2  ;;  %v1218_v48 = vmax.f32 %v4438_v49, %v1217_v51  ;;  %v5220_v47 = vmax.f32 %v4264_v60, %v4268_v3  ;;  %v4540_v57 = vadd.f32 %v1192_v30, %v968_v31 }
 0x17b   :  { %v902_v33 = vmax.f32 %v900_v16, %v901_v34  ;;  %v906_v27 = vmax.f32 %v4453_v42, %v905_v21  ;;  %v1205_v6 = vrot.slane %v4448_v29, 4  ;;  %v915_v39 = vrot.slane %v914_v40, 1 }
 0x17c   :  { %v4538_v2 = vmax.f32 %v5220_v47, %v4453_v42  ;;  %v920_v25 = vmax.f32 %v918_v20, %v919_v22  ;;  %v1219_v7 = vrot.slane %v1218_v48, 2  ;;  %v1223_v60 = vrot.slane %v4455_v43, 4 }
 0x17d   :  { %v903_v58 = vrot.slane %v902_v33, 1  ;;  %v907_v10 = vrot.slane %v906_v27, 2  ;;  %v1206_v26 = vmax.f32 %v4448_v29, %v1205_v6  ;;  %v916_v3 = vmax.f32 %v914_v40, %v915_v39 }
 0x17e   :  { %v921_v31 = vrot.slane %v920_v25, 1  ;;  %v1220_v51 = vmax.f32 %v1218_v48, %v1219_v7  ;;  %v1224_v20 = vmax.f32 %v4455_v43, %v1223_v60  ;;  %v1211_v24 = vrot.slane %v4462_v46, 4 }
 0x17f   :  { %v904_v16 = vmax.f32 %v902_v33, %v903_v58  ;;  %v908_v30 = vmax.f32 %v906_v27, %v907_v10  ;;  %v1207_v34 = vrot.slane %v1206_v26, 2  ;;  %v973_v21 = vadd.f32 %v916_v3, %v4321_v50 }
 0x180   :  { %v922_v22 = vmax.f32 %v920_v25, %v921_v31  ;;  %v1221_v47 = vrot.slane %v1220_v51, 1  ;;  %v1225_v39 = vrot.slane %v1224_v20, 2  ;;  %v1212_v33 = vmax.f32 %v4462_v46, %v1211_v24 }
 0x181   :  { %v971_v6 = vadd.f32 %v904_v16, %v4329_v62  ;;  %v909_v63 = vrot.slane %v908_v30, 1  ;;  %v1208_v40 = vmax.f32 %v1206_v26, %v1207_v34  ;;  %v935_v25 = vrot.slane %v4474_v59, 4  ;;  %v5222_v34 = vld [vmem:[#allocation9_spill] sm:$0xff] }
 0x182   :  { %v974_v48 = vadd.f32 %v922_v22, %v4332_v38  ;;  %v1222_v7 = vmax.f32 %v1220_v51, %v1221_v47  ;;  %v1226_v50 = vmax.f32 %v1224_v20, %v1225_v39  ;;  %v1213_v3 = vrot.slane %v1212_v33, 2  ;;  %v5223_v20 = vld [vmem:[#allocation10_spill] sm:$0xff] }
 0x183   :  { %v910_v58 = vmax.f32 %v908_v30, %v909_v63  ;;  %v1209_v10 = vrot.slane %v1208_v40, 1  ;;  %v5221_v62 = vmax.f32 %v4273_v35, %v4275_v54  ;;  %v923_v38 = vrot.slane %v4476_v0, 4 }
 0x184   :  { %v4559_v60 = vadd.f32 %v1222_v7, %v973_v21  ;;  %v1227_v51 = vrot.slane %v1226_v50, 1  ;;  %v936_v63 = vmax.f32 %v4474_v59, %v935_v25  ;;  %v1214_v16 = vmax.f32 %v1212_v33, %v1213_v3 }
 0x185   :  { %v4565_v26 = vmax.f32 %v5221_v62, %v4474_v59  ;;  %v972_v24 = vadd.f32 %v910_v58, %v4342_v44  ;;  %v1210_v31 = vmax.f32 %v1208_v40, %v1209_v10  ;;  %v924_v30 = vmax.f32 %v4476_v0, %v923_v38  ;;  %v5225_v44 = vld [vmem:[#allocation11_spill] sm:$0xff]  ;;  %v5226_v40 = vld [vmem:[#allocation12_spill] sm:$0xff] }
 0x186   :  { %v5224_v21 = vmax.f32 %v5222_v34, %v5223_v20  ;;  %v941_v35 = vrot.slane %v4482_v1, 4  ;;  %v1228_v47 = vmax.f32 %v1226_v50, %v1227_v51  ;;  %v937_v39 = vrot.slane %v936_v63, 2 }
 0x187   :  { %v4578_v54 = vadd.f32 %v1210_v31, %v971_v6  ;;  %v5227_v7 = vmax.f32 %v5225_v44, %v5226_v40  ;;  %v1215_v33 = vrot.slane %v1214_v16, 1  ;;  %v925_v58 = vrot.slane %v924_v30, 2  ;;  %v5234_v6 = vld [vmem:[#allocation17_spill] sm:$0xff] }
 0x188   :  { %v4575_v22 = vmax.f32 %v5224_v21, %v4476_v0  ;;  %v942_v10 = vmax.f32 %v4482_v1, %v941_v35  ;;  %v1241_v25 = vrot.slane %v4478_v5, 4  ;;  %v4588_v0 = vadd.f32 %v1228_v47, %v974_v48 }
 0x189   :  { %v4584_v59 = vmax.f32 %v5227_v7, %v4482_v1  ;;  %v938_v3 = vmax.f32 %v936_v63, %v937_v39  ;;  %v929_v50 = vrot.slane %v4487_v12, 4  ;;  %v1216_v62 = vmax.f32 %v1214_v16, %v1215_v33 }
 0x18a   :  { %v926_v38 = vmax.f32 %v924_v30, %v925_v58  ;;  %v943_v31 = vrot.slane %v942_v10, 2  ;;  %v1242_v51 = vmax.f32 %v4478_v5, %v1241_v25  ;;  %v5228_v1 = vmax.f32 %v4289_v13, %v4293_v32  ;;  %v5230_v25 = vld [vmem:[#allocation14_spill] sm:$0xff] }
 0x18b   :  { %v939_v34 = vrot.slane %v938_v3, 1  ;;  %v930_v20 = vmax.f32 %v4487_v12, %v929_v50  ;;  %v1229_v63 = vrot.slane %v4484_v14, 4  ;;  %v4602_v21 = vadd.f32 %v1216_v62, %v972_v24 }
 0x18c   :  { %v4599_v48 = vmax.f32 %v5228_v1, %v4487_v12  ;;  %v927_v35 = vrot.slane %v926_v38, 1  ;;  %v944_v47 = vmax.f32 %v942_v10, %v943_v31  ;;  %v1243_v16 = vrot.slane %v1242_v51, 2 }
 0x18d   :  { %v940_v30 = vmax.f32 %v938_v3, %v939_v34  ;;  %v931_v39 = vrot.slane %v930_v20, 2  ;;  %v1230_v44 = vmax.f32 %v4484_v14, %v1229_v63  ;;  %v1247_v13 = vrot.slane %v4489_v8, 4  ;;  %v5231_v63 = vld [vmem:[#allocation15_spill] sm:$0xff] }
 0x18e   :  { %5229 = vst [vmem:[#allocation13_spill] sm:$0xff] %v4599_v48  ;;  %v928_v7 = vmax.f32 %v926_v38, %v927_v35  ;;  %v945_v33 = vrot.slane %v944_v47, 1  ;;  %v1244_v58 = vmax.f32 %v1242_v51, %v1243_v16  ;;  %v1235_v38 = vrot.slane %v4492_v15, 4  ;;  %v5235_v51 = vld [vmem:[#allocation18_spill] sm:$0xff] }
 0x18f   :  { %v977_v32 = vadd.f32 %v940_v30, %v4355_v61  ;;  %v932_v12 = vmax.f32 %v930_v20, %v931_v39  ;;  %v1231_v24 = vrot.slane %v1230_v44, 2  ;;  %v1248_v31 = vmax.f32 %v4489_v8, %v1247_v13 }
 0x190   :  { %v975_v3 = vadd.f32 %v928_v7, %v5230_v25  ;;  %v946_v50 = vmax.f32 %v944_v47, %v945_v33  ;;  %v1245_v62 = vrot.slane %v1244_v58, 1  ;;  %v1236_v39 = vmax.f32 %v4492_v15, %v1235_v38  ;;  %v5233_v33 = vld [vmem:[#allocation16_spill] sm:$0xff] }
 0x191   :  { %v933_v34 = vrot.slane %v932_v12, 1  ;;  %v1232_v1 = vmax.f32 %v1230_v44, %v1231_v24  ;;  %v1249_v35 = vrot.slane %v1248_v31, 2  ;;  %v5236_v27 = vmax.f32 %v5234_v6, %v5235_v51  ;;  %v5241_v6 = vld [vmem:[#allocation19_spill] sm:$0xff] }
 0x192   :  { %v978_v61 = vadd.f32 %v946_v50, %v5231_v63  ;;  %v1246_v20 = vmax.f32 %v1244_v58, %v1245_v62  ;;  %v1237_v44 = vrot.slane %v1236_v39, 2 }
 0x193   :  { %v934_v16 = vmax.f32 %v932_v12, %v933_v34  ;;  %v1233_v30 = vrot.slane %v1232_v1, 1  ;;  %v1250_v47 = vmax.f32 %v1248_v31, %v1249_v35 }
 0x194   :  { %v4618_v7 = vadd.f32 %v1246_v20, %v977_v32  ;;  %v1238_v32 = vmax.f32 %v1236_v39, %v1237_v44 }
 0x195   :  { %v976_v13 = vadd.f32 %v934_v16, %v5233_v33  ;;  %v1234_v25 = vmax.f32 %v1232_v1, %v1233_v30  ;;  %v3328_v24 = vpop.f32.mrb[32].mxu0  ;;  %v1251_v10 = vrot.slane %v1250_v47, 1 }
 0x196   :  { %5232 = vst [vmem:[#allocation5_spill] sm:$0xff] %v4618_v7  ;;  %v1475_v40 = vrot.slane %v3328_v24, 4  ;;  %v4624_v50 = vmax.f32 %v5236_v27, %v3328_v24  ;;  %v4626_v58 = vpop.f32.mrb[32].mxu1  ;;  %v1400_v12 = vpop.f32.mrb[33].mxu0  ;;  %v5242_v27 = vld [vmem:[#allocation20_spill] sm:$0xff]  ;;  %v1239_v39 = vrot.slane %v1238_v32, 1 }
 0x197   :  { %5238 = vst [vmem:[#allocation7_spill] sm:$0xff] %v4626_v58  ;;  %v4628_v62 = vadd.f32 %v1234_v25, %v975_v3  ;;  %v1781_v31 = vrot.slane %v4626_v58, 4  ;;  %v1463_v34 = vrot.slane %v1400_v12, 4  ;;  %v4631_v38 = vpop.f32.mrb[33].mxu1  ;;  %v3329_v1 = vpop.f32.mrb[34].mxu0  ;;  %v1252_v63 = vmax.f32 %v1250_v47, %v1251_v10 }
 0x198   :  { %5237 = vst [vmem:[#allocation6_spill] sm:$0xff] %v4624_v50  ;;  %5240 = vst [vmem:[#allocation9_spill] sm:$0xff] %v4631_v38  ;;  %v1476_v20 = vmax.f32 %v3328_v24, %v1475_v40  ;;  %v5243_v51 = vmax.f32 %v5241_v6, %v5242_v27  ;;  %v4640_v30 = vpop.f32.mrb[34].mxu1  ;;  %v1403_v3 = vpop.f32.mrb[35].mxu0  ;;  %v1769_v44 = vrot.slane %v4631_v38, 4  ;;  %v1481_v24 = vrot.slane %v3329_v1, 4 }
 0x199   :  { %5239 = vst [vmem:[#allocation8_spill] sm:$0xff] %v4628_v62  ;;  %5245 = vst [vmem:[#allocation11_spill] sm:$0xff] %v4640_v30  ;;  %v1782_v33 = vmax.f32 %v4626_v58, %v1781_v31  ;;  %v1464_v25 = vmax.f32 %v1400_v12, %v1463_v34  ;;  %v4644_v42 = vpop.f32.mrb[35].mxu1  ;;  %v4646_v40 = vadd.f32 %v1252_v63, %v978_v61  ;;  %v5248_v31 = vld [vmem:[#allocation22_spill] sm:$0xff]  ;;  %v1787_v61 = vrot.slane %v4640_v30, 4 }
 0x19a   :  { %v4638_v16 = vmax.f32 %v5243_v51, %v1400_v12  ;;  %5246 = vst [vmem:[#allocation12_spill] sm:$0xff] %v4644_v42  ;;  %v1477_v10 = vrot.slane %v1476_v20, 2  ;;  %v1240_v6 = vmax.f32 %v1238_v32, %v1239_v39  ;;  %v1770_v35 = vmax.f32 %v4631_v38, %v1769_v44  ;;  %v5249_v12 = vld [vmem:[#allocation21_spill] sm:$0xff] }
 0x19b   :  { %5247 = vst [vmem:[#allocation14_spill] sm:$0xff] %v4646_v40  ;;  %v1783_v27 = vrot.slane %v1782_v33, 2  ;;  %v1465_v51 = vrot.slane %v1464_v25, 2  ;;  %v1482_v62 = vmax.f32 %v3329_v1, %v1481_v24  ;;  %v5250_v34 = vmax.f32 %v5248_v31, %v5249_v12 }
 0x19c   :  { %5244 = vst [vmem:[#allocation10_spill] sm:$0xff] %v4638_v16  ;;  %v1478_v50 = vmax.f32 %v1476_v20, %v1477_v10  ;;  %v4657_v63 = vadd.f32 %v1240_v6, %v976_v13  ;;  %v1771_v47 = vrot.slane %v1770_v35, 2  ;;  %v1788_v15 = vmax.f32 %v4640_v30, %v1787_v61 }
 0x19d   :  { %v4654_v58 = vmax.f32 %v5250_v34, %v3329_v1  ;;  %v1784_v40 = vmax.f32 %v1782_v33, %v1783_v27  ;;  %v1466_v7 = vmax.f32 %v1464_v25, %v1465_v51  ;;  %v3332_v16 = vpop.f32.mrb[36].mxu0  ;;  %v1483_v39 = vrot.slane %v1482_v62, 2 }
 0x19e   :  { %5252 = vst [vmem:[#allocation16_spill] sm:$0xff] %v4657_v63  ;;  %v1479_v32 = vrot.slane %v1478_v50, 1  ;;  %v1416_v44 = vpop.f32.mrb[37].mxu0  ;;  %v4662_v10 = vpop.f32.mrb[36].mxu1  ;;  %v1772_v31 = vmax.f32 %v1770_v35, %v1771_v47  ;;  %v1469_v12 = vrot.slane %v1403_v3, 4  ;;  %v1789_v27 = vrot.slane %v1788_v15, 2 }
 0x19f   :  { %5251 = vst [vmem:[#allocation15_spill] sm:$0xff] %v4654_v58  ;;  %v1785_v1 = vrot.slane %v1784_v40, 1  ;;  %v1467_v24 = vrot.slane %v1466_v7, 1  ;;  %v3333_v13 = vpop.f32.mrb[38].mxu0  ;;  %v4664_v6 = vpop.f32.mrb[37].mxu1  ;;  %v1484_v25 = vmax.f32 %v1482_v62, %v1483_v39  ;;  %v5254_v51 = vmax.f32 %v4401_v55, %v4391_v52 }
 0x1a0   :  { %5253 = vst [vmem:[#allocation17_spill] sm:$0xff] %v4664_v6  ;;  %v1480_v33 = vmax.f32 %v1478_v50, %v1479_v32  ;;  %v1419_v61 = vpop.f32.mrb[39].mxu0  ;;  %v4671_v20 = vpop.f32.mrb[38].mxu1  ;;  %v1773_v38 = vrot.slane %v1772_v31, 1  ;;  %v1470_v63 = vmax.f32 %v1403_v3, %v1469_v12  ;;  %v1790_v50 = vmax.f32 %v1788_v15, %v1789_v27 }
 0x1a1   :  { %v4669_v34 = vmax.f32 %v5254_v51, %v1403_v3  ;;  %v1786_v30 = vmax.f32 %v1784_v40, %v1785_v1  ;;  %v1468_v58 = vmax.f32 %v1466_v7, %v1467_v24  ;;  %v4673_v35 = vpop.f32.mrb[39].mxu1  ;;  %v1485_v48 = vrot.slane %v1484_v25, 1 }
 0x1a2   :  { %v1577_v47 = vadd.f32 %v1480_v33, %v4417_v19  ;;  %v1775_v62 = vrot.slane %v4644_v42, 4  ;;  %v1774_v52 = vmax.f32 %v1772_v31, %v1773_v38  ;;  %v1471_v55 = vrot.slane %v1470_v63, 2 }
 0x1a3   :  { %5255 = vst [vmem:[#allocation18_spill] sm:$0xff] %v4669_v34  ;;  %v1575_v32 = vadd.f32 %v1468_v58, %v4420_v18  ;;  %v1486_v7 = vmax.f32 %v1484_v25, %v1485_v48  ;;  %v1791_v40 = vrot.slane %v1790_v50, 1  ;;  %v1499_v24 = vrot.slane %v3332_v16, 4 }
 0x1a4   :  { %v4680_v51 = vadd.f32 %v1786_v30, %v1577_v47  ;;  %v1776_v3 = vmax.f32 %v4644_v42, %v1775_v62  ;;  %v1472_v19 = vmax.f32 %v1470_v63, %v1471_v55  ;;  %v5258_v15 = vmax.f32 %v4425_v4, %v4403_v11  ;;  %v5260_v63 = vld [vmem:[#allocation23_spill] sm:$0xff]  ;;  %v5264_v55 = vld [vmem:[#allocation25_spill] sm:$0xff] }
 0x1a5   :  { %v4683_v1 = vadd.f32 %v1774_v52, %v1575_v32  ;;  %v4690_v18 = vpop.f32.mrb[40].mxu0  ;;  %v1578_v58 = vadd.f32 %v1486_v7, %v4429_v53  ;;  %v1792_v38 = vmax.f32 %v1790_v50, %v1791_v40  ;;  %v1487_v31 = vrot.slane %v1416_v44, 4  ;;  %v5265_v7 = vld [vmem:[#allocation24_spill] sm:$0xff] }
 0x1a6   :  { %5256 = vst [vmem:[#allocation19_spill] sm:$0xff] %v4680_v51  ;;  %v4688_v12 = vmax.f32 %v5258_v15, %v3332_v16  ;;  %v1777_v30 = vrot.slane %v1776_v3, 2  ;;  %v4693_v48 = vpop.f32.mrb[41].mxu0  ;;  %v4695_v33 = vpop.f32.mrb[40].mxu1  ;;  %v1473_v25 = vrot.slane %v1472_v19, 1  ;;  %v1500_v27 = vmax.f32 %v3332_v16, %v1499_v24 }
 0x1a7   :  { %5257 = vst [vmem:[#allocation20_spill] sm:$0xff] %v4683_v1  ;;  %v5261_v47 = vmax.f32 %v4434_v45, %v5260_v63  ;;  %v1505_v11 = vrot.slane %v3333_v13, 4  ;;  %v4702_v4 = vpop.f32.mrb[42].mxu0  ;;  %v4704_v32 = vpop.f32.mrb[41].mxu1  ;;  %v4706_v53 = vadd.f32 %v1792_v38, %v1578_v58  ;;  %v1488_v52 = vmax.f32 %v1416_v44, %v1487_v31 }
 0x1a8   :  { %5259 = vst [vmem:[#allocation22_spill] sm:$0xff] %v4688_v12  ;;  %v1778_v50 = vmax.f32 %v1776_v3, %v1777_v30  ;;  %v5266_v40 = vmax.f32 %v5264_v55, %v5265_v7  ;;  %v4713_v16 = vpop.f32.mrb[43].mxu0  ;;  %v4715_v24 = vpop.f32.mrb[42].mxu1  ;;  %v1474_v45 = vmax.f32 %v1472_v19, %v1473_v25  ;;  %v1501_v63 = vrot.slane %v1500_v27, 2  ;;  %v5268_v30 = vld [vmem:[#allocation26_spill] sm:$0xff] }
 0x1a9   :  { %v4700_v62 = vmax.f32 %v5261_v47, %v1416_v44  ;;  %5263 = vst [vmem:[#allocation23_spill] sm:$0xff] %v4706_v53  ;;  %v1506_v47 = vmax.f32 %v3333_v13, %v1505_v11  ;;  %v1805_v39 = vrot.slane %v4662_v10, 4  ;;  %v4718_v42 = vpop.f32.mrb[43].mxu1  ;;  %v1489_v38 = vrot.slane %v1488_v52, 2 }
 0x1aa   :  { %v4711_v15 = vmax.f32 %v5266_v40, %v3333_v13  ;;  %v1779_v58 = vrot.slane %v1778_v50, 1  ;;  %v1493_v3 = vrot.slane %v1419_v61, 4  ;;  %v1576_v31 = vadd.f32 %v1474_v45, %v5268_v30 }
 0x1ab   :  { %5262 = vst [vmem:[#allocation21_spill] sm:$0xff] %v4700_v62  ;;  %v1502_v55 = vmax.f32 %v1500_v27, %v1501_v63  ;;  %v1507_v7 = vrot.slane %v1506_v47, 2  ;;  %v1806_v40 = vmax.f32 %v4662_v10, %v1805_v39  ;;  %v1490_v19 = vmax.f32 %v1488_v52, %v1489_v38 }
 0x1ac   :  { %5267 = vst [vmem:[#allocation25_spill] sm:$0xff] %v4711_v15  ;;  %v1780_v53 = vmax.f32 %v1778_v50, %v1779_v58  ;;  %v1494_v25 = vmax.f32 %v1419_v61, %v1493_v3  ;;  %v5269_v13 = vmax.f32 %v4460_v36, %v4411_v41  ;;  %v1793_v44 = vrot.slane %v4664_v6, 4 }
 0x1ad   :  { %v1503_v34 = vrot.slane %v1502_v55, 1  ;;  %v1508_v1 = vmax.f32 %v1506_v47, %v1507_v7  ;;  %v1807_v51 = vrot.slane %v1806_v40, 2  ;;  %v4730_v12 = vpop.f32.mrb[44].mxu0  ;;  %v1491_v27 = vrot.slane %v1490_v19, 1 }
 0x1ae   :  { %v4727_v11 = vmax.f32 %v5269_v13, %v1419_v61  ;;  %v4732_v45 = vadd.f32 %v1780_v53, %v1576_v31  ;;  %v1495_v63 = vrot.slane %v1494_v25, 2  ;;  %v4736_v50 = vpop.f32.mrb[45].mxu0  ;;  %v4738_v52 = vpop.f32.mrb[44].mxu1  ;;  %v1794_v47 = vmax.f32 %v4664_v6, %v1793_v44 }
 0x1af   :  { %5270 = vst [vmem:[#allocation24_spill] sm:$0xff] %v4738_v52  ;;  %v1504_v41 = vmax.f32 %v1502_v55, %v1503_v34  ;;  %v1509_v36 = vrot.slane %v1508_v1, 1  ;;  %v1808_v61 = vmax.f32 %v1806_v40, %v1807_v51  ;;  %v4741_v58 = vpop.f32.mrb[46].mxu0  ;;  %v4743_v38 = vpop.f32.mrb[45].mxu1  ;;  %v1492_v53 = vmax.f32 %v1490_v19, %v1491_v27 }
 0x1b0   :  { %5271 = vst [vmem:[#allocation26_spill] sm:$0xff] %v4743_v38  ;;  %v1496_v3 = vmax.f32 %v1494_v25, %v1495_v63  ;;  %v1811_v30 = vrot.slane %v4671_v20, 4  ;;  %v4748_v7 = vpop.f32.mrb[47].mxu0  ;;  %v4750_v13 = vpop.f32.mrb[46].mxu1  ;;  %v1795_v44 = vrot.slane %v1794_v47, 2  ;;  %v1799_v27 = vrot.slane %v4673_v35, 4 }
 0x1b1   :  { %5272 = vst [vmem:[#allocation28_spill] sm:$0xff] %v4750_v13  ;;  %v1581_v34 = vadd.f32 %v1504_v41, %v4498_v28  ;;  %v1510_v51 = vmax.f32 %v1508_v1, %v1509_v36  ;;  %v1809_v55 = vrot.slane %v1808_v61, 1  ;;  %v4753_v40 = vpop.f32.mrb[47].mxu1  ;;  %v1579_v39 = vadd.f32 %v1492_v53, %v4509_v17 }
 0x1b2   :  { %5273 = vst [vmem:[#allocation29_spill] sm:$0xff] %v4753_v40  ;;  %v1497_v19 = vrot.slane %v1496_v3, 1  ;;  %v1812_v25 = vmax.f32 %v4671_v20, %v1811_v30  ;;  %v1796_v15 = vmax.f32 %v1794_v47, %v1795_v44  ;;  %v1800_v41 = vmax.f32 %v4673_v35, %v1799_v27 }
 0x1b3   :  { %v1582_v63 = vadd.f32 %v1510_v51, %v4530_v23  ;;  %v1810_v31 = vmax.f32 %v1808_v61, %v1809_v55  ;;  %v1523_v36 = vrot.slane %v4690_v18, 4  ;;  %v5274_v53 = vmax.f32 %v4505_v56, %v4438_v49 }
 0x1b4   :  { %v1498_v28 = vmax.f32 %v1496_v3, %v1497_v19  ;;  %v1813_v1 = vrot.slane %v1812_v25, 2  ;;  %v1797_v17 = vrot.slane %v1796_v15, 1  ;;  %v1511_v23 = vrot.slane %v4693_v48, 4 }
 0x1b5   :  { %v4763_v62 = vadd.f32 %v1810_v31, %v1581_v34  ;;  %v4769_v30 = vmax.f32 %v5274_v53, %v4690_v18  ;;  %v1801_v3 = vrot.slane %v1800_v41, 2  ;;  %v1524_v51 = vmax.f32 %v4690_v18, %v1523_v36 }
 0x1b6   :  { %v1580_v61 = vadd.f32 %v1498_v28, %v4540_v57  ;;  %v1814_v47 = vmax.f32 %v1812_v25, %v1813_v1  ;;  %v1798_v55 = vmax.f32 %v1796_v15, %v1797_v17  ;;  %v1512_v44 = vmax.f32 %v4693_v48, %v1511_v23 }
 0x1b7   :  { %v5275_v31 = vmax.f32 %v4516_v9, %v4448_v29  ;;  %v1529_v49 = vrot.slane %v4702_v4, 4  ;;  %v1802_v19 = vmax.f32 %v1800_v41, %v1801_v3  ;;  %v1525_v27 = vrot.slane %v1524_v51, 2  ;;  %v5300_v41 = vld [vmem:[#allocation9_spill] sm:$0xff] }
 0x1b8   :  { %v1815_v56 = vrot.slane %v1814_v47, 1  ;;  %v5276_v57 = vmax.f32 %v4524_v37, %v4455_v43  ;;  %v4788_v18 = vadd.f32 %v1798_v55, %v1579_v39  ;;  %v1513_v15 = vrot.slane %v1512_v44, 2 }
 0x1b9   :  { %v4779_v34 = vmax.f32 %v5275_v31, %v4693_v48  ;;  %v1530_v28 = vmax.f32 %v4702_v4, %v1529_v49  ;;  %v1829_v29 = vrot.slane %v4695_v33, 4  ;;  %v1803_v48 = vrot.slane %v1802_v19, 1 }
 0x1ba   :  { %v4786_v25 = vmax.f32 %v5276_v57, %v4702_v4  ;;  %v1816_v9 = vmax.f32 %v1814_v47, %v1815_v56  ;;  %v1526_v1 = vmax.f32 %v1524_v51, %v1525_v27  ;;  %v1514_v36 = vmax.f32 %v1512_v44, %v1513_v15 }
 0x1bb   :  { %v1531_v17 = vrot.slane %v1530_v28, 2  ;;  %v1830_v53 = vmax.f32 %v4695_v33, %v1829_v29  ;;  %v1517_v43 = vrot.slane %v4713_v16, 4  ;;  %v1804_v39 = vmax.f32 %v1802_v19, %v1803_v48 }
 0x1bc   :  { %v4796_v37 = vadd.f32 %v1816_v9, %v1582_v63  ;;  %v1527_v23 = vrot.slane %v1526_v1, 1  ;;  %v5277_v4 = vmax.f32 %v4538_v2, %v4462_v46  ;;  %v1515_v3 = vrot.slane %v1514_v36, 1  ;;  %v5299_v63 = vld [vmem:[#allocation10_spill] sm:$0xff] }
 0x1bd   :  { %v1532_v51 = vmax.f32 %v1530_v28, %v1531_v17  ;;  %v1831_v55 = vrot.slane %v1830_v53, 2  ;;  %v1518_v44 = vmax.f32 %v4713_v16, %v1517_v43  ;;  %v4805_v31 = vadd.f32 %v1804_v39, %v1580_v61 }
 0x1be   :  { %v4802_v47 = vmax.f32 %v5277_v4, %v4713_v16  ;;  %v1528_v49 = vmax.f32 %v1526_v1, %v1527_v23  ;;  %v1817_v56 = vrot.slane %v4704_v32, 4  ;;  %v1516_v19 = vmax.f32 %v1514_v36, %v1515_v3 }
 0x1bf   :  { %v1533_v27 = vrot.slane %v1532_v51, 1  ;;  %v1832_v57 = vmax.f32 %v1830_v53, %v1831_v55  ;;  %v1519_v15 = vrot.slane %v1518_v44, 2  ;;  %v1835_v28 = vrot.slane %v4715_v24, 4 }
 0x1c0   :  { %v1585_v46 = vadd.f32 %v1528_v49, %v4559_v60  ;;  %v1818_v2 = vmax.f32 %v4704_v32, %v1817_v56  ;;  %v1583_v61 = vadd.f32 %v1516_v19, %v4578_v54  ;;  %v1823_v17 = vrot.slane %v4718_v42, 4 }
 0x1c1   :  { %v1534_v29 = vmax.f32 %v1532_v51, %v1533_v27  ;;  %v1833_v9 = vrot.slane %v1832_v57, 1  ;;  %v1520_v48 = vmax.f32 %v1518_v44, %v1519_v15  ;;  %v1836_v36 = vmax.f32 %v4715_v24, %v1835_v28 }
 0x1c2   :  { %v1819_v1 = vrot.slane %v1818_v2, 2  ;;  %v1547_v23 = vrot.slane %v4730_v12, 4  ;;  %v1824_v54 = vmax.f32 %v4718_v42, %v1823_v17  ;;  %v5278_v51 = vmax.f32 %v4565_v26, %v4478_v5 }
 0x1c3   :  { %v1586_v53 = vadd.f32 %v1534_v29, %v4588_v0  ;;  %v1834_v43 = vmax.f32 %v1832_v57, %v1833_v9  ;;  %v1521_v39 = vrot.slane %v1520_v48, 1  ;;  %v1837_v3 = vrot.slane %v1836_v36, 2 }
 0x1c4   :  { %v1820_v4 = vmax.f32 %v1818_v2, %v1819_v1  ;;  %v4827_v55 = vmax.f32 %v5278_v51, %v4730_v12  ;;  %v1548_v56 = vmax.f32 %v4730_v12, %v1547_v23  ;;  %v1535_v0 = vrot.slane %v4736_v50, 4 }
 0x1c5   :  { %v4829_v44 = vadd.f32 %v1834_v43, %v1585_v46  ;;  %v1522_v49 = vmax.f32 %v1520_v48, %v1521_v39  ;;  %v1838_v27 = vmax.f32 %v1836_v36, %v1837_v3  ;;  %v1825_v57 = vrot.slane %v1824_v54, 2 }
 0x1c6   :  { %5279 = vst [vmem:[#allocation30_spill] sm:$0xff] %v4827_v55  ;;  %v1821_v19 = vrot.slane %v1820_v4, 1  ;;  %v5280_v15 = vmax.f32 %v4575_v22, %v4484_v14  ;;  %v1549_v26 = vrot.slane %v1548_v56, 2  ;;  %v1536_v46 = vmax.f32 %v4736_v50, %v1535_v0 }
 0x1c7   :  { %v1584_v5 = vadd.f32 %v1522_v49, %v4602_v21  ;;  %v1553_v28 = vrot.slane %v4741_v58, 4  ;;  %v1839_v12 = vrot.slane %v1838_v27, 1  ;;  %v1826_v9 = vmax.f32 %v1824_v54, %v1825_v57  ;;  %v5286_v49 = vld [vmem:[#allocation27_spill] sm:$0xff] }
 0x1c8   :  { %v4837_v2 = vmax.f32 %v5280_v15, %v4736_v50  ;;  %v1822_v29 = vmax.f32 %v1820_v4, %v1821_v19  ;;  %v5282_v48 = vmax.f32 %v4584_v59, %v4489_v8  ;;  %v1550_v36 = vmax.f32 %v1548_v56, %v1549_v26 }
 0x1c9   :  { %v1537_v14 = vrot.slane %v1536_v46, 2  ;;  %v1554_v22 = vmax.f32 %v4741_v58, %v1553_v28  ;;  %v1853_v21 = vrot.slane %v4738_v52, 4  ;;  %v1840_v50 = vmax.f32 %v1838_v27, %v1839_v12  ;;  %v5290_v28 = vld [vmem:[#allocation5_spill] sm:$0xff] }
 0x1ca   :  { %5281 = vst [vmem:[#allocation31_spill] sm:$0xff] %v4837_v2  ;;  %v4846_v1 = vmax.f32 %v5282_v48, %v4741_v58  ;;  %v4850_v17 = vadd.f32 %v1822_v29, %v1583_v61  ;;  %v1827_v43 = vrot.slane %v1826_v9, 1  ;;  %v1551_v23 = vrot.slane %v1550_v36, 1  ;;  %v5285_v58 = vld [vmem:[#allocation13_spill] sm:$0xff] }
 0x1cb   :  { %v1538_v4 = vmax.f32 %v1536_v46, %v1537_v14  ;;  %v1555_v3 = vrot.slane %v1554_v22, 2  ;;  %v1854_v8 = vmax.f32 %v4738_v52, %v1853_v21  ;;  %v4855_v59 = vadd.f32 %v1840_v50, %v1586_v53  ;;  %v5291_v21 = vld [vmem:[#allocation8_spill] sm:$0xff]  ;;  %v5295_v46 = vld [vmem:[#allocation7_spill] sm:$0xff] }
 0x1cc   :  { %5283 = vst [vmem:[#allocation32_spill] sm:$0xff] %v4846_v1  ;;  %v1828_v54 = vmax.f32 %v1826_v9, %v1827_v43  ;;  %v1541_v51 = vrot.slane %v4748_v7, 4  ;;  %v5287_v61 = vmax.f32 %v5285_v58, %v5286_v49  ;;  %v1552_v0 = vmax.f32 %v1550_v36, %v1551_v23 }
 0x1cd   :  { %5284 = vst [vmem:[#allocation33_spill] sm:$0xff] %v4855_v59  ;;  %v1539_v19 = vrot.slane %v1538_v4, 1  ;;  %v1556_v27 = vmax.f32 %v1554_v22, %v1555_v3  ;;  %v1855_v57 = vrot.slane %v1854_v8, 2  ;;  %v1841_v53 = vrot.slane %v4743_v38, 4 }
 0x1ce   :  { %v4862_v56 = vmax.f32 %v5287_v61, %v4748_v7  ;;  %v4864_v15 = vadd.f32 %v1828_v54, %v1584_v5  ;;  %v1542_v26 = vmax.f32 %v4748_v7, %v1541_v51  ;;  %v1589_v29 = vadd.f32 %v1552_v0, %v5290_v28  ;;  %v5292_v51 = vld [vmem:[#allocation14_spill] sm:$0xff] }
 0x1cf   :  { %v1540_v12 = vmax.f32 %v1538_v4, %v1539_v19  ;;  %v1557_v9 = vrot.slane %v1556_v27, 1  ;;  %v1856_v48 = vmax.f32 %v1854_v8, %v1855_v57  ;;  %v1842_v36 = vmax.f32 %v4743_v38, %v1841_v53  ;;  %v5294_v8 = vld [vmem:[#allocation6_spill] sm:$0xff] }
 0x1d0   :  { %5288 = vst [vmem:[#allocation13_spill] sm:$0xff] %v4862_v56  ;;  %5289 = vst [vmem:[#allocation27_spill] sm:$0xff] %v4864_v15  ;;  %v1543_v14 = vrot.slane %v1542_v26, 2  ;;  %v1859_v22 = vrot.slane %v4750_v13, 4  ;;  %v1847_v23 = vrot.slane %v4753_v40, 4  ;;  %v5301_v6 = vmax.f32 %v5299_v63, %v5300_v41 }
 0x1d1   :  { %v1587_v7 = vadd.f32 %v1540_v12, %v5291_v21  ;;  %v1558_v50 = vmax.f32 %v1556_v27, %v1557_v9  ;;  %v1857_v43 = vrot.slane %v1856_v48, 1  ;;  %v1843_v54 = vrot.slane %v1842_v36, 2 }
 0x1d2   :  { %v1544_v3 = vmax.f32 %v1542_v26, %v1543_v14  ;;  %v1860_v4 = vmax.f32 %v4750_v13, %v1859_v22  ;;  %v1848_v61 = vmax.f32 %v4753_v40, %v1847_v23 }
 0x1d3   :  { %v1590_v58 = vadd.f32 %v1558_v50, %v5292_v51  ;;  %v1858_v49 = vmax.f32 %v1856_v48, %v1857_v43  ;;  %v1844_v19 = vmax.f32 %v1842_v36, %v1843_v54  ;;  %v5296_v50 = vmax.f32 %v5294_v8, %v5295_v46  ;;  %v5297_v54 = vld [vmem:[#allocation16_spill] sm:$0xff] }
 0x1d4   :  { %v1545_v0 = vrot.slane %v1544_v3, 1  ;;  %v1861_v57 = vrot.slane %v1860_v4, 2  ;;  %v1849_v27 = vrot.slane %v1848_v61, 2 }
 0x1d5   :  { %v4882_v53 = vadd.f32 %v1858_v49, %v1589_v29  ;;  %v3392_v28 = vpop.f32.mrb[48].mxu0  ;;  %v1845_v26 = vrot.slane %v1844_v19, 1 }
 0x1d6   :  { %v1546_v12 = vmax.f32 %v1544_v3, %v1545_v0  ;;  %v1862_v9 = vmax.f32 %v1860_v4, %v1861_v57  ;;  %v2087_v14 = vrot.slane %v3392_v28, 4  ;;  %v3424_v22 = vpop.f32.mrb[48].mxu1  ;;  %v2012_v21 = vpop.f32.mrb[49].mxu0  ;;  %v1850_v5 = vmax.f32 %v1848_v61, %v1849_v27 }
 0x1d7   :  { %5293 = vst [vmem:[#allocation5_spill] sm:$0xff] %v4882_v53  ;;  %v2173_v48 = vmax.f32 %v5296_v50, %v3392_v28  ;;  %v2393_v43 = vrot.slane %v3424_v22, 4  ;;  %v2075_v23 = vrot.slane %v2012_v21, 4  ;;  %v2318_v51 = vpop.f32.mrb[49].mxu1  ;;  %v3393_v36 = vpop.f32.mrb[50].mxu0  ;;  %v1846_v49 = vmax.f32 %v1844_v19, %v1845_v26 }
 0x1d8   :  { %v1588_v29 = vadd.f32 %v1546_v12, %v5297_v54  ;;  %v1863_v39 = vrot.slane %v1862_v9, 1  ;;  %v2088_v60 = vmax.f32 %v3392_v28, %v2087_v14  ;;  %v3425_v3 = vpop.f32.mrb[50].mxu1  ;;  %v4888_v0 = vpop.f32.mrb[51].mxu0  ;;  %v1851_v4 = vrot.slane %v1850_v5, 1 }
 0x1d9   :  { %v2394_v57 = vmax.f32 %v3424_v22, %v2393_v43  ;;  %v2479_v16 = vmax.f32 %v2173_v48, %v3424_v22  ;;  %v2076_v61 = vmax.f32 %v2012_v21, %v2075_v23  ;;  %v4890_v27 = vpop.f32.mrb[51].mxu1  ;;  %v4892_v46 = vadd.f32 %v1846_v49, %v1587_v7 }
 0x1da   :  { %v1864_v8 = vmax.f32 %v1862_v9, %v1863_v39  ;;  %v2089_v50 = vrot.slane %v2088_v60, 2  ;;  %v2171_v12 = vmax.f32 %v5301_v6, %v2012_v21  ;;  %v1852_v19 = vmax.f32 %v1850_v5, %v1851_v4  ;;  %v5304_v4 = vld [vmem:[#allocation15_spill] sm:$0xff] }
 0x1db   :  { %5298 = vst [vmem:[#allocation8_spill] sm:$0xff] %v4892_v46  ;;  %v2395_v26 = vrot.slane %v2394_v57, 2  ;;  %v2521_v28 = vrot.slane %v2479_v16, 4  ;;  %v2077_v14 = vrot.slane %v2076_v61, 2  ;;  %v2381_v43 = vrot.slane %v2318_v51, 4 }
 0x1dc   :  { %v4897_v54 = vadd.f32 %v1864_v8, %v1590_v58  ;;  %v2090_v40 = vmax.f32 %v2088_v60, %v2089_v50  ;;  %v2477_v22 = vmax.f32 %v2171_v12, %v2318_v51  ;;  %v4899_v48 = vadd.f32 %v1852_v19, %v1588_v29  ;;  %v5305_v8 = vld [vmem:[#allocation11_spill] sm:$0xff] }
 0x1dd   :  { %v2396_v23 = vmax.f32 %v2394_v57, %v2395_v26  ;;  %v2522_v7 = vadd.f32 %v2521_v28, %v2479_v16  ;;  %v2078_v49 = vmax.f32 %v2076_v61, %v2077_v14  ;;  %v4901_v39 = vpop.f32.mrb[52].mxu0  ;;  %v2382_v56 = vmax.f32 %v2318_v51, %v2381_v43 }
 0x1de   :  { %5302 = vst [vmem:[#allocation14_spill] sm:$0xff] %v4897_v54  ;;  %5303 = vst [vmem:[#allocation6_spill] sm:$0xff] %v4899_v48  ;;  %v2091_v9 = vrot.slane %v2090_v40, 1  ;;  %v2509_v41 = vrot.slane %v2477_v22, 4  ;;  %v2093_v6 = vrot.slane %v3393_v36, 4  ;;  %v4903_v63 = vpop.f32.mrb[52].mxu1  ;;  %v5306_v29 = vmax.f32 %v5304_v4, %v5305_v8 }
 0x1df   :  { %v4905_v5 = vpop.f32.mrb[53].mxu0  ;;  %v2397_v58 = vrot.slane %v2396_v23, 1  ;;  %v2523_v21 = vrot.slane %v2522_v7, 2  ;;  %v2079_v60 = vrot.slane %v2078_v49, 1  ;;  %v4910_v57 = vpop.f32.mrb[53].mxu1  ;;  %v2383_v12 = vrot.slane %v2382_v56, 2 }
 0x1e0   :  { %v2174_v50 = vmax.f32 %v5306_v29, %v3393_v36  ;;  %v4912_v16 = vpop.f32.mrb[54].mxu0  ;;  %v2092_v61 = vmax.f32 %v2090_v40, %v2091_v9  ;;  %v2510_v51 = vadd.f32 %v2509_v41, %v2477_v22  ;;  %v2094_v19 = vmax.f32 %v3393_v36, %v2093_v6  ;;  %v4914_v26 = vpop.f32.mrb[54].mxu1  ;;  %v5307_v4 = vld [vmem:[#allocation19_spill] sm:$0xff]  ;;  %v5308_v40 = vld [vmem:[#allocation20_spill] sm:$0xff] }
 0x1e1   :  { %v4916_v28 = vpop.f32.mrb[55].mxu0  ;;  %v2398_v14 = vmax.f32 %v2396_v23, %v2397_v58  ;;  %v2524_v43 = vadd.f32 %v2523_v21, %v2522_v7  ;;  %v2080_v48 = vmax.f32 %v2078_v49, %v2079_v60  ;;  %v2399_v54 = vrot.slane %v3425_v3, 4  ;;  %v4918_v46 = vpop.f32.mrb[55].mxu1 }
 0x1e2   :  { %v2189_v8 = vadd.f32 %v2092_v61, %v5307_v4  ;;  %v2384_v29 = vmax.f32 %v2382_v56, %v2383_v12  ;;  %v2511_v13 = vrot.slane %v2510_v51, 2  ;;  %v2095_v1 = vrot.slane %v2094_v19, 2  ;;  %v5309_v12 = vld [vmem:[#allocation18_spill] sm:$0xff]  ;;  %v5310_v4 = vld [vmem:[#allocation12_spill] sm:$0xff] }
 0x1e3   :  { %v2525_v53 = vrot.slane %v2524_v43, 1  ;;  %v2187_v9 = vadd.f32 %v2080_v48, %v5308_v40  ;;  %v2400_v22 = vmax.f32 %v3425_v3, %v2399_v54  ;;  %v2480_v36 = vmax.f32 %v2174_v50, %v3425_v3 }
 0x1e4   :  { %v2495_v41 = vadd.f32 %v2398_v14, %v2189_v8  ;;  %v2385_v6 = vrot.slane %v2384_v29, 1  ;;  %v2512_v38 = vadd.f32 %v2511_v13, %v2510_v51  ;;  %v2096_v2 = vmax.f32 %v2094_v19, %v2095_v1 }
 0x1e5   :  { %v2526_v23 = vadd.f32 %v2525_v53, %v2524_v43  ;;  %v2401_v7 = vrot.slane %v2400_v22, 2  ;;  %v2527_v49 = vrot.slane %v2480_v36, 4  ;;  %v2081_v58 = vrot.slane %v4888_v0, 4  ;;  %v4923_v21 = vpop.f32.mrb[56].mxu0 }
 0x1e6   :  { %v2386_v60 = vmax.f32 %v2384_v29, %v2385_v6  ;;  %v2513_v56 = vrot.slane %v2512_v38, 1  ;;  %v2097_v61 = vrot.slane %v2096_v2, 1  ;;  %v5311_v48 = vmax.f32 %v5309_v12, %v5310_v4  ;;  %v4929_v3 = vpop.f32.mrb[56].mxu1  ;;  %v4931_v50 = vpop.f32.mrb[57].mxu0 }
 0x1e7   :  { %v2607_v13 = vadd.f32 %v2526_v23, %v2495_v41  ;;  %v2402_v1 = vmax.f32 %v2400_v22, %v2401_v7  ;;  %v2528_v53 = vadd.f32 %v2527_v49, %v2480_v36  ;;  %v2082_v51 = vmax.f32 %v4888_v0, %v2081_v58  ;;  %v4934_v19 = vpop.f32.mrb[57].mxu1  ;;  %v4936_v14 = vpop.f32.mrb[58].mxu0  ;;  %v5312_v23 = vld [vmem:[#allocation23_spill] sm:$0xff] }
 0x1e8   :  { %v2172_v54 = vmax.f32 %v5311_v48, %v4888_v0  ;;  %v2493_v43 = vadd.f32 %v2386_v60, %v2187_v9  ;;  %v2514_v8 = vadd.f32 %v2513_v56, %v2512_v38  ;;  %v2098_v29 = vmax.f32 %v2096_v2, %v2097_v61  ;;  %v4939_v6 = vpop.f32.mrb[58].mxu1  ;;  %v4941_v12 = vpop.f32.mrb[59].mxu0 }
 0x1e9   :  { %v2387_v40 = vrot.slane %v4890_v27, 4  ;;  %v3040_v4 = vmul.f32 -0.0625, %v2607_v13  ;;  %v2403_v48 = vrot.slane %v2402_v1, 1  ;;  %v2529_v41 = vrot.slane %v2528_v53, 2  ;;  %v4943_v36 = vpop.f32.mrb[59].mxu1 }
 0x1ea   :  { %v2083_v22 = vrot.slane %v2082_v51, 2  ;;  %v2605_v0 = vadd.f32 %v2514_v8, %v2493_v43  ;;  %v2190_v7 = vadd.f32 %v2098_v29, %v5312_v23  ;;  %v2478_v38 = vmax.f32 %v2172_v54, %v4890_v27 }
 0x1eb   :  { %v2388_v49 = vmax.f32 %v4890_v27, %v2387_v40  ;;  %v2657_v2 = vmul.f32 1.442695, %v3040_v4  ;;  %v2404_v9 = vmax.f32 %v2402_v1, %v2403_v48  ;;  %v2530_v58 = vadd.f32 %v2529_v41, %v2528_v53  ;;  %v5313_v4 = vld [vmem:[#allocation22_spill] sm:$0xff] }
 0x1ec   :  { %v2084_v60 = vmax.f32 %v2082_v51, %v2083_v22  ;;  %v3038_v56 = vmul.f32 -0.0625, %v2605_v0  ;;  %v2515_v15 = vrot.slane %v2478_v38, 4  ;;  %v2111_v13 = vrot.slane %v4901_v39, 4 }
 0x1ed   :  { %v2389_v61 = vrot.slane %v2388_v49, 2  ;;  %3577 = vpow2.f32 %v2657_v2  ;;  %v2496_v52 = vadd.f32 %v2404_v9, %v2190_v7  ;;  %v2531_v55 = vrot.slane %v2530_v58, 1  ;;  %v4949_v43 = vpop.f32.mrb[60].mxu0 }
 0x1ee   :  { %v2085_v59 = vrot.slane %v2084_v60, 1  ;;  %v2653_v8 = vmul.f32 1.442695, %v3038_v56  ;;  %v2516_v40 = vadd.f32 %v2515_v15, %v2478_v38  ;;  %v2112_v27 = vmax.f32 %v4901_v39, %v2111_v13  ;;  %v4952_v54 = vpop.f32.mrb[60].mxu1  ;;  %v4954_v1 = vpop.f32.mrb[61].mxu0 }
 0x1ef   :  { %v2390_v29 = vmax.f32 %v2388_v49, %v2389_v61  ;;  %v2532_v53 = vadd.f32 %v2531_v55, %v2530_v58  ;;  %v5314_v48 = vmax.f32 %v5313_v4, %v4662_v10  ;;  %v2417_v22 = vrot.slane %v4903_v63, 4  ;;  %v4961_v0 = vpop.f32.mrb[61].mxu1  ;;  %v4963_v23 = vpop.f32.mrb[62].mxu0 }
 0x1f0   :  { %v2086_v51 = vmax.f32 %v2084_v60, %v2085_v59  ;;  %5315 = vst [vmem:[#allocation7_spill] sm:$0xff] %v4963_v23  ;;  %3579 = vpow2.f32 %v2653_v8  ;;  %v2517_v7 = vrot.slane %v2516_v40, 2  ;;  %v2113_v49 = vrot.slane %v2112_v27, 2  ;;  %v4965_v38 = vpop.f32.mrb[62].mxu1  ;;  %v4967_v2 = vpop.f32.mrb[63].mxu0 }
 0x1f1   :  { %v2177_v41 = vmax.f32 %v5314_v48, %v4901_v39  ;;  %v2391_v15 = vrot.slane %v2390_v29, 1  ;;  %5316 = vst [vmem:[#allocation16_spill] sm:$0xff] %v4965_v38  ;;  %5317 = vst [vmem:[#allocation10_spill] sm:$0xff] %v4967_v2  ;;  %v2608_v55 = vadd.f32 %v2532_v53, %v2496_v52  ;;  %v2418_v10 = vmax.f32 %v4903_v63, %v2417_v22  ;;  %v4972_v9 = vpop.f32.mrb[63].mxu1  ;;  %v5319_v48 = vld [vmem:[#allocation21_spill] sm:$0xff] }
 0x1f2   :  { %v2188_v59 = vadd.f32 %v2086_v51, %v4732_v45  ;;  %5318 = vst [vmem:[#allocation9_spill] sm:$0xff] %v4972_v9  ;;  %v2518_v60 = vadd.f32 %v2517_v7, %v2516_v40  ;;  %v2114_v56 = vmax.f32 %v2112_v27, %v2113_v49  ;;  %v2099_v61 = vrot.slane %v4905_v5, 4  ;;  %v5320_v2 = vld [vmem:[#allocation17_spill] sm:$0xff] }
 0x1f3   :  { %v2483_v39 = vmax.f32 %v2177_v41, %v4903_v63  ;;  %v2392_v58 = vmax.f32 %v2390_v29, %v2391_v15  ;;  %v3041_v13 = vmul.f32 -0.0625, %v2608_v55  ;;  %v2419_v8 = vrot.slane %v2418_v10, 2 }
 0x1f4   :  { %v5321_v52 = vmax.f32 %v5319_v48, %v5320_v2  ;;  %v2519_v51 = vrot.slane %v2518_v60, 1  ;;  %v2115_v22 = vrot.slane %v2114_v56, 1  ;;  %v2100_v63 = vmax.f32 %v4905_v5, %v2099_v61 }
 0x1f5   :  { %v2545_v4 = vrot.slane %v2483_v39, 4  ;;  %v2494_v45 = vadd.f32 %v2392_v58, %v2188_v59  ;;  %v2659_v41 = vmul.f32 1.442695, %v3041_v13  ;;  %v2420_v9 = vmax.f32 %v2418_v10, %v2419_v8 }
 0x1f6   :  { %v2175_v53 = vmax.f32 %v5321_v52, %v4905_v5  ;;  %v2405_v40 = vrot.slane %v4910_v57, 4  ;;  %v2520_v27 = vadd.f32 %v2519_v51, %v2518_v60  ;;  %v2116_v15 = vmax.f32 %v2114_v56, %v2115_v22 }
 0x1f7   :  { %v2546_v29 = vadd.f32 %v2545_v4, %v2483_v39  ;;  %v2101_v7 = vrot.slane %v2100_v63, 2  ;;  %v3578_v55 = vpop.eup %3577  ;;  %3581 = vpow2.f32 %v2659_v41  ;;  %v2421_v38 = vrot.slane %v2420_v9, 1 }
 0x1f8   :  { %v2481_v49 = vmax.f32 %v2175_v53, %v4910_v57  ;;  %v2406_v59 = vmax.f32 %v4910_v57, %v2405_v40  ;;  %v2606_v58 = vadd.f32 %v2520_v27, %v2494_v45  ;;  %v2193_v48 = vadd.f32 %v2116_v15, %v4763_v62 }
 0x1f9   :  { %v2547_v2 = vrot.slane %v2546_v29, 2  ;;  %v2102_v5 = vmax.f32 %v2100_v63, %v2101_v7  ;;  %v2422_v61 = vmax.f32 %v2420_v9, %v2421_v38  ;;  %v2117_v4 = vrot.slane %v4912_v16, 4  ;;  %v5322_v38 = vld [vmem:[#allocation25_spill] sm:$0xff] }
 0x1fa   :  { %v2407_v39 = vrot.slane %v2406_v59, 2  ;;  %v2533_v13 = vrot.slane %v2481_v49, 4  ;;  %v3580_v8 = vpop.eup %3579  ;;  %v3039_v60 = vmul.f32 -0.0625, %v2606_v58  ;;  %v2687_v45 = vadd.f32 1.0, %v3578_v55 }
 0x1fb   :  { %v2548_v10 = vadd.f32 %v2547_v2, %v2546_v29  ;;  %v2103_v56 = vrot.slane %v2102_v5, 1  ;;  %v2499_v52 = vadd.f32 %v2422_v61, %v2193_v48  ;;  %v2118_v57 = vmax.f32 %v4912_v16, %v2117_v4 }
 0x1fc   :  { %v2408_v51 = vmax.f32 %v2406_v59, %v2407_v39  ;;  %v2655_v22 = vmul.f32 1.442695, %v3039_v60  ;;  %v2534_v23 = vadd.f32 %v2533_v13, %v2481_v49  ;;  %v5323_v9 = vmax.f32 %v5322_v38, %v4671_v20 }
 0x1fd   :  { %v2549_v53 = vrot.slane %v2548_v10, 1  ;;  %v2104_v41 = vmax.f32 %v2102_v5, %v2103_v56  ;;  %v2119_v15 = vrot.slane %v2118_v57, 2  ;;  %v2423_v59 = vrot.slane %v4914_v26, 4 }
 0x1fe   :  { %v2409_v63 = vrot.slane %v2408_v51, 1  ;;  %v2178_v29 = vmax.f32 %v5323_v9, %v4912_v16  ;;  %3583 = vpow2.f32 %v2655_v22  ;;  %v2535_v27 = vrot.slane %v2534_v23, 2 }
 0x1ff   :  { %v2550_v62 = vadd.f32 %v2549_v53, %v2548_v10  ;;  %v2191_v40 = vadd.f32 %v2104_v41, %v4788_v18  ;;  %v2120_v55 = vmax.f32 %v2118_v57, %v2119_v15  ;;  %v2105_v48 = vrot.slane %v4916_v28, 4 }
 0x200   :  { %v2410_v2 = vmax.f32 %v2408_v51, %v2409_v63  ;;  %v2484_v49 = vmax.f32 %v2178_v29, %v4914_v26  ;;  %v2536_v58 = vadd.f32 %v2535_v27, %v2534_v23  ;;  %v5324_v20 = vmax.f32 %v4727_v11, %v4673_v35 }
 0x201   :  { %v2611_v7 = vadd.f32 %v2550_v62, %v2499_v52  ;;  %v3582_v5 = vpop.eup %3581  ;;  %v2424_v10 = vmax.f32 %v4914_v26, %v2423_v59  ;;  %3585 = vrcp.f32 %v2687_v45  ;;  %v2121_v60 = vrot.slane %v2120_v55, 1 }
 0x202   :  { %v2176_v16 = vmax.f32 %v5324_v20, %v4916_v28  ;;  %v2497_v18 = vadd.f32 %v2410_v2, %v2191_v40  ;;  %v2551_v39 = vrot.slane %v2484_v49, 4  ;;  %v2537_v13 = vrot.slane %v2536_v58, 1 }
 0x203   :  { %v3044_v61 = vmul.f32 -0.0625, %v2611_v7  ;;  %v2106_v56 = vmax.f32 %v4916_v28, %v2105_v48  ;;  %v2685_v23 = vadd.f32 1.0, %v3580_v8  ;;  %v2425_v4 = vrot.slane %v2424_v10, 2 }
 0x204   :  { %v2552_v52 = vadd.f32 %v2551_v39, %v2484_v49  ;;  %v2411_v53 = vrot.slane %v4918_v46, 4  ;;  %v2688_v51 = vadd.f32 1.0, %v3582_v5  ;;  %v2538_v22 = vadd.f32 %v2537_v13, %v2536_v58 }
 0x205   :  { %v2122_v35 = vmax.f32 %v2120_v55, %v2121_v60  ;;  %v2107_v11 = vrot.slane %v2106_v56, 2  ;;  %v2665_v41 = vmul.f32 1.442695, %v3044_v61  ;;  %v2426_v57 = vmax.f32 %v2424_v10, %v2425_v4 }
 0x206   :  { %v2553_v62 = vrot.slane %v2552_v52, 2  ;;  %v2412_v26 = vmax.f32 %v4918_v46, %v2411_v53  ;;  %v2609_v63 = vadd.f32 %v2538_v22, %v2497_v18  ;;  %v2482_v28 = vmax.f32 %v2176_v16, %v4918_v46 }
 0x207   :  { %v2194_v45 = vadd.f32 %v2122_v35, %v4796_v37  ;;  %v2108_v38 = vmax.f32 %v2106_v56, %v2107_v11  ;;  %v2427_v8 = vrot.slane %v2426_v57, 1  ;;  %v2135_v40 = vrot.slane %v4923_v21, 4 }
 0x208   :  { %v2554_v9 = vadd.f32 %v2553_v62, %v2552_v52  ;;  %v2413_v29 = vrot.slane %v2412_v26, 2  ;;  %v3584_v27 = vpop.eup %3583  ;;  %v3042_v15 = vmul.f32 -0.0625, %v2609_v63  ;;  %v2539_v2 = vrot.slane %v2482_v28, 4 }
 0x209   :  { %v2109_v7 = vrot.slane %v2108_v38, 1  ;;  %v5325_v59 = vmax.f32 %v4769_v30, %v4695_v33  ;;  %3587 = vpow2.f32 %v2665_v41  ;;  %v2428_v58 = vmax.f32 %v2426_v57, %v2427_v8 }
 0x20a   :  { %v2555_v37 = vrot.slane %v2554_v9, 1  ;;  %v2414_v55 = vmax.f32 %v2412_v26, %v2413_v29  ;;  %v2661_v48 = vmul.f32 1.442695, %v3042_v15  ;;  %v2540_v20 = vadd.f32 %v2539_v2, %v2482_v28 }
 0x20b   :  { %v2181_v49 = vmax.f32 %v5325_v59, %v4923_v21  ;;  %v2110_v46 = vmax.f32 %v2108_v38, %v2109_v7  ;;  %v2136_v16 = vmax.f32 %v4923_v21, %v2135_v40  ;;  %v2686_v5 = vadd.f32 1.0, %v3584_v27  ;;  %v5010_v39 = vpop.eup %3585 }
 0x20c   :  { %v2500_v61 = vadd.f32 %v2428_v58, %v2194_v45  ;;  %v2556_v18 = vadd.f32 %v2555_v37, %v2554_v9  ;;  %v2415_v10 = vrot.slane %v2414_v55, 1  ;;  %3589 = vpow2.f32 %v2661_v48 }
 0x20d   :  { %v2192_v13 = vadd.f32 %v2110_v46, %v4805_v31  ;;  %v2541_v33 = vrot.slane %v2540_v20, 2  ;;  %v2137_v30 = vrot.slane %v2136_v16, 2  ;;  %v2441_v4 = vrot.slane %v4929_v3, 4 }
 0x20e   :  { %v2612_v60 = vadd.f32 %v2556_v18, %v2500_v61  ;;  %v2416_v56 = vmax.f32 %v2414_v55, %v2415_v10  ;;  %v2487_v52 = vmax.f32 %v2181_v49, %v4929_v3  ;;  %v2123_v21 = vrot.slane %v4931_v50, 4 }
 0x20f   :  { %v2542_v53 = vadd.f32 %v2541_v33, %v2540_v20  ;;  %v2138_v22 = vmax.f32 %v2136_v16, %v2137_v30  ;;  %v5326_v35 = vmax.f32 %v4779_v34, %v4704_v32  ;;  %v2442_v31 = vmax.f32 %v4929_v3, %v2441_v4 }
 0x210   :  { %v3045_v41 = vmul.f32 -0.0625, %v2612_v60  ;;  %v2498_v57 = vadd.f32 %v2416_v56, %v2192_v13  ;;  %v2569_v62 = vrot.slane %v2487_v52, 4  ;;  %3591 = vrcp.f32 %v2685_v23 }
 0x211   :  { %v2179_v11 = vmax.f32 %v5326_v35, %v4931_v50  ;;  %v2543_v26 = vrot.slane %v2542_v53, 1  ;;  %v2139_v63 = vrot.slane %v2138_v22, 1  ;;  %v2124_v45 = vmax.f32 %v4931_v50, %v2123_v21 }
 0x212   :  { %3593 = vrcp.f32 %v2688_v51  ;;  %v2443_v38 = vrot.slane %v2442_v31, 2  ;;  %v2570_v28 = vadd.f32 %v2569_v62, %v2487_v52  ;;  %v2429_v8 = vrot.slane %v4934_v19, 4 }
 0x213   :  { %3595 = vrcp.f32 %v2686_v5  ;;  %v2544_v9 = vadd.f32 %v2543_v26, %v2542_v53  ;;  %v2140_v29 = vmax.f32 %v2138_v22, %v2139_v63  ;;  %v2125_v32 = vrot.slane %v2124_v45, 2  ;;  %v3588_v34 = vpop.eup %3587 }
 0x214   :  { %v2667_v40 = vmul.f32 1.442695, %v3045_v41  ;;  %v2444_v27 = vmax.f32 %v2442_v31, %v2443_v38  ;;  %v2571_v15 = vrot.slane %v2570_v28, 2  ;;  %v2430_v3 = vmax.f32 %v4934_v19, %v2429_v8 }
 0x215   :  { %v2610_v23 = vadd.f32 %v2544_v9, %v2498_v57  ;;  %v2197_v7 = vadd.f32 %v2140_v29, %v4829_v44  ;;  %v2126_v2 = vmax.f32 %v2124_v45, %v2125_v32  ;;  %v2485_v50 = vmax.f32 %v2179_v11, %v4934_v19 }
 0x216   :  { %v2445_v51 = vrot.slane %v2444_v27, 1  ;;  %v2572_v59 = vadd.f32 %v2571_v15, %v2570_v28  ;;  %v2431_v49 = vrot.slane %v2430_v3, 2  ;;  %v2141_v58 = vrot.slane %v4936_v14, 4  ;;  %v3590_v37 = vpop.eup %3589 }
 0x217   :  { %v3043_v55 = vmul.f32 -0.0625, %v2610_v23  ;;  %v2127_v48 = vrot.slane %v2126_v2, 1  ;;  %v2557_v46 = vrot.slane %v2485_v50, 4  ;;  %v5327_v20 = vmax.f32 %v4786_v25, %v4715_v24 }
 0x218   :  { %v2691_v5 = vadd.f32 1.0, %v3588_v34  ;;  %v2446_v61 = vmax.f32 %v2444_v27, %v2445_v51  ;;  %v2573_v44 = vrot.slane %v2572_v59, 1  ;;  %v2432_v18 = vmax.f32 %v2430_v3, %v2431_v49 }
 0x219   :  { %v2182_v16 = vmax.f32 %v5327_v20, %v4936_v14  ;;  %3597 = vpow2.f32 %v2667_v40  ;;  %v2128_v19 = vmax.f32 %v2126_v2, %v2127_v48  ;;  %v2558_v10 = vadd.f32 %v2557_v46, %v2485_v50  ;;  %v5329_v50 = vld [vmem:[#allocation33_spill] sm:$0xff] }
 0x21a   :  { %v2142_v13 = vmax.f32 %v4936_v14, %v2141_v58  ;;  %v2689_v33 = vadd.f32 1.0, %v3590_v37  ;;  %v2503_v30 = vadd.f32 %v2446_v61, %v2197_v7  ;;  %v2574_v60 = vadd.f32 %v2573_v44, %v2572_v59  ;;  %v5032_v4 = vpop.eup %3591 }
 0x21b   :  { %v2433_v56 = vrot.slane %v2432_v18, 1  ;;  %v2663_v52 = vmul.f32 1.442695, %v3043_v55  ;;  %v2195_v53 = vadd.f32 %v2128_v19, %v4850_v17  ;;  %v2559_v24 = vrot.slane %v2558_v10, 2 }
 0x21c   :  { %v2143_v25 = vrot.slane %v2142_v13, 2  ;;  %v5035_v22 = vpop.eup %3593  ;;  %v2615_v21 = vadd.f32 %v2574_v60, %v2503_v30  ;;  %v2447_v11 = vrot.slane %v4939_v6, 4  ;;  %v2488_v41 = vmax.f32 %v2182_v16, %v4939_v6  ;;  %v5330_v16 = vld [vmem:[#allocation30_spill] sm:$0xff] }
 0x21d   :  { %v2434_v35 = vmax.f32 %v2432_v18, %v2433_v56  ;;  %v5039_v14 = vpop.eup %3595  ;;  %v2560_v57 = vadd.f32 %v2559_v24, %v2558_v10  ;;  %v2129_v62 = vrot.slane %v4941_v12, 4  ;;  %v5328_v17 = vmax.f32 %v4802_v47, %v4718_v42 }
 0x21e   :  { %v2144_v31 = vmax.f32 %v2142_v13, %v2143_v25  ;;  %v3048_v63 = vmul.f32 -0.0625, %v2615_v21  ;;  %v2448_v38 = vmax.f32 %v4939_v6, %v2447_v11  ;;  %v2575_v28 = vrot.slane %v2488_v41, 4  ;;  %v5333_v25 = vld [vmem:[#allocation27_spill] sm:$0xff] }
 0x21f   :  { %v2180_v26 = vmax.f32 %v5328_v17, %v4941_v12  ;;  %v2501_v45 = vadd.f32 %v2434_v35, %v2195_v53  ;;  %3599 = vrcp.f32 %v2691_v5  ;;  %v2561_v8 = vrot.slane %v2560_v57, 1  ;;  %v5331_v5 = vld [vmem:[#allocation24_spill] sm:$0xff] }
 0x220   :  { %v2145_v9 = vrot.slane %v2144_v31, 1  ;;  %v2130_v29 = vmax.f32 %v4941_v12, %v2129_v62  ;;  %3601 = vrcp.f32 %v2689_v33  ;;  %v2449_v32 = vrot.slane %v2448_v38, 2 }
 0x221   :  { %v2576_v34 = vadd.f32 %v2575_v28, %v2488_v41  ;;  %v2435_v40 = vrot.slane %v4943_v36, 4  ;;  %3603 = vpow2.f32 %v2663_v52  ;;  %v2562_v27 = vadd.f32 %v2561_v8, %v2560_v57  ;;  %v5335_v28 = vld [vmem:[#allocation26_spill] sm:$0xff] }
 0x222   :  { %v2146_v15 = vmax.f32 %v2144_v31, %v2145_v9  ;;  %v2131_v42 = vrot.slane %v2130_v29, 2  ;;  %v2673_v47 = vmul.f32 1.442695, %v3048_v63  ;;  %v2450_v3 = vmax.f32 %v2448_v38, %v2449_v32  ;;  %v5334_v38 = vld [vmem:[#allocation31_spill] sm:$0xff] }
 0x223   :  { %v2577_v23 = vrot.slane %v2576_v34, 2  ;;  %v2436_v6 = vmax.f32 %v4943_v36, %v2435_v40  ;;  %v3598_v7 = vpop.eup %3597  ;;  %v2613_v2 = vadd.f32 %v2562_v27, %v2501_v45  ;;  %v2486_v12 = vmax.f32 %v2180_v26, %v4943_v36 }
 0x224   :  { %v2198_v51 = vadd.f32 %v2146_v15, %v5329_v50  ;;  %v2132_v59 = vmax.f32 %v2130_v29, %v2131_v42  ;;  %v2451_v49 = vrot.slane %v2450_v3, 1  ;;  %v2159_v55 = vrot.slane %v4949_v43, 4 }
 0x225   :  { %v2578_v58 = vadd.f32 %v2577_v23, %v2576_v34  ;;  %v2437_v37 = vrot.slane %v2436_v6, 2  ;;  %v3046_v48 = vmul.f32 -0.0625, %v2613_v2  ;;  %v2563_v20 = vrot.slane %v2486_v12, 4 }
 0x226   :  { %v2133_v46 = vrot.slane %v2132_v59, 1  ;;  %v5332_v61 = vmax.f32 %v5330_v16, %v5331_v5  ;;  %3605 = vpow2.f32 %v2673_v47  ;;  %v2452_v18 = vmax.f32 %v2450_v3, %v2451_v49  ;;  %v5338_v5 = vld [vmem:[#allocation7_spill] sm:$0xff] }
 0x227   :  { %v2579_v19 = vrot.slane %v2578_v58, 1  ;;  %v2438_v10 = vmax.f32 %v2436_v6, %v2437_v37  ;;  %v2669_v13 = vmul.f32 1.442695, %v3046_v48  ;;  %v2564_v36 = vadd.f32 %v2563_v20, %v2486_v12  ;;  %v5337_v37 = vld [vmem:[#allocation5_spill] sm:$0xff] }
 0x228   :  { %v2185_v44 = vmax.f32 %v5332_v61, %v4949_v43  ;;  %v2134_v33 = vmax.f32 %v2132_v59, %v2133_v46  ;;  %v2160_v30 = vmax.f32 %v4949_v43, %v2159_v55  ;;  %v2692_v60 = vadd.f32 1.0, %v3598_v7 }
 0x229   :  { %v2504_v56 = vadd.f32 %v2452_v18, %v2198_v51  ;;  %v2580_v52 = vadd.f32 %v2579_v19, %v2578_v58  ;;  %v2439_v53 = vrot.slane %v2438_v10, 1  ;;  %v5058_v24 = vpop.eup %3599  ;;  %3607 = vpow2.f32 %v2669_v13  ;;  %v5339_v13 = vld [vmem:[#allocation32_spill] sm:$0xff] }
 0x22a   :  { %v2196_v21 = vadd.f32 %v2134_v33, %v5333_v25  ;;  %v2565_v35 = vrot.slane %v2564_v36, 2  ;;  %v2161_v11 = vrot.slane %v2160_v30, 2  ;;  %v5061_v41 = vpop.eup %3601  ;;  %v2465_v62 = vrot.slane %v4952_v54, 4  ;;  %v5340_v33 = vld [vmem:[#allocation28_spill] sm:$0xff] }
 0x22b   :  { %v2616_v57 = vadd.f32 %v2580_v52, %v2504_v56  ;;  %v2440_v31 = vmax.f32 %v2438_v10, %v2439_v53  ;;  %v2491_v17 = vmax.f32 %v2185_v44, %v4952_v54  ;;  %v3604_v43 = vpop.eup %3603  ;;  %v2147_v45 = vrot.slane %v4954_v1, 4 }
 0x22c   :  { %v2566_v26 = vadd.f32 %v2565_v35, %v2564_v36  ;;  %v2162_v63 = vmax.f32 %v2160_v30, %v2161_v11  ;;  %v5336_v8 = vmax.f32 %v5334_v38, %v5335_v28  ;;  %v2466_v34 = vmax.f32 %v4952_v54, %v2465_v62 }
 0x22d   :  { %v3049_v29 = vmul.f32 -0.0625, %v2616_v57  ;;  %v2502_v32 = vadd.f32 %v2440_v31, %v2196_v21  ;;  %v2593_v40 = vrot.slane %v2491_v17, 4  ;;  %3609 = vrcp.f32 %v2692_v60 }
 0x22e   :  { %v2183_v9 = vmax.f32 %v5336_v8, %v4954_v1  ;;  %v2567_v27 = vrot.slane %v2566_v26, 1  ;;  %v2163_v15 = vrot.slane %v2162_v63, 1  ;;  %v2148_v42 = vmax.f32 %v4954_v1, %v2147_v45  ;;  %v5343_v8 = vld [vmem:[#allocation16_spill] sm:$0xff] }
 0x22f   :  { %v2675_v47 = vmul.f32 1.442695, %v3049_v29  ;;  %v2467_v3 = vrot.slane %v2466_v34, 2  ;;  %v2594_v23 = vadd.f32 %v2593_v40, %v2491_v17  ;;  %v2453_v6 = vrot.slane %v4961_v0, 4  ;;  %v5344_v40 = vld [vmem:[#allocation10_spill] sm:$0xff] }
 0x230   :  { %v2690_v7 = vadd.f32 1.0, %v3604_v43  ;;  %v2568_v2 = vadd.f32 %v2567_v27, %v2566_v26  ;;  %v2164_v50 = vmax.f32 %v2162_v63, %v2163_v15  ;;  %v2149_v51 = vrot.slane %v2148_v42, 2  ;;  %v3606_v59 = vpop.eup %3605  ;;  %v5342_v43 = vld [vmem:[#allocation8_spill] sm:$0xff]  ;;  %v5345_v15 = vld [vmem:[#allocation13_spill] sm:$0xff] }
 0x231   :  { %3611 = vpow2.f32 %v2675_v47  ;;  %v2468_v12 = vmax.f32 %v2466_v34, %v2467_v3  ;;  %v2595_v49 = vrot.slane %v2594_v23, 2  ;;  %v2454_v54 = vmax.f32 %v4961_v0, %v2453_v6 }
 0x232   :  { %v2614_v58 = vadd.f32 %v2568_v2, %v2502_v32  ;;  %v2201_v55 = vadd.f32 %v2164_v50, %v5337_v37  ;;  %v2150_v48 = vmax.f32 %v2148_v42, %v2149_v51  ;;  %v2489_v1 = vmax.f32 %v2183_v9, %v4961_v0  ;;  %v5346_v42 = vld [vmem:[#allocation29_spill] sm:$0xff] }
 0x233   :  { %v2469_v46 = vrot.slane %v2468_v12, 1  ;;  %v2596_v20 = vadd.f32 %v2595_v49, %v2594_v23  ;;  %v2455_v16 = vrot.slane %v2454_v54, 2  ;;  %v2165_v61 = vrot.slane %v5338_v5, 4  ;;  %v3608_v44 = vpop.eup %3607  ;;  %v5348_v37 = vld [vmem:[#allocation9_spill] sm:$0xff] }
 0x234   :  { %v3047_v18 = vmul.f32 -0.0625, %v2614_v58  ;;  %v2151_v19 = vrot.slane %v2150_v48, 1  ;;  %v2581_v10 = vrot.slane %v2489_v1, 4  ;;  %v5341_v36 = vmax.f32 %v5339_v13, %v5340_v33 }
 0x235   :  { %v2695_v60 = vadd.f32 1.0, %v3606_v59  ;;  %v2470_v56 = vmax.f32 %v2468_v12, %v2469_v46  ;;  %v2597_v52 = vrot.slane %v2596_v20, 1  ;;  %v2456_v53 = vmax.f32 %v2454_v54, %v2455_v16 }
 0x236   :  { %v2186_v30 = vmax.f32 %v5341_v36, %v5338_v5  ;;  %v2671_v25 = vmul.f32 1.442695, %v3047_v18  ;;  %v2152_v0 = vmax.f32 %v2150_v48, %v2151_v19  ;;  %v2582_v21 = vadd.f32 %v2581_v10, %v2489_v1 }
 0x237   :  { %v2166_v35 = vmax.f32 %v5338_v5, %v2165_v61  ;;  %v2693_v11 = vadd.f32 1.0, %v3608_v44  ;;  %v2507_v57 = vadd.f32 %v2470_v56, %v2201_v55  ;;  %v2598_v31 = vadd.f32 %v2597_v52, %v2596_v20  ;;  %v5082_v17 = vpop.eup %3609  ;;  %v5349_v61 = vld [vmem:[#allocation14_spill] sm:$0xff] }
 0x238   :  { %v2457_v62 = vrot.slane %v2456_v53, 1  ;;  %3613 = vpow2.f32 %v2671_v25  ;;  %v2199_v26 = vadd.f32 %v2152_v0, %v5342_v43  ;;  %v2583_v63 = vrot.slane %v2582_v21, 2 }
 0x239   :  { %v2167_v45 = vrot.slane %v2166_v35, 2  ;;  %v5085_v38 = vadd.f32 %v2598_v31, %v2507_v57  ;;  %v2471_v9 = vrot.slane %v5343_v8, 4  ;;  %v2492_v29 = vmax.f32 %v2186_v30, %v5343_v8 }
 0x23a   :  { %v2458_v28 = vmax.f32 %v2456_v53, %v2457_v62  ;;  %v2584_v32 = vadd.f32 %v2583_v63, %v2582_v21  ;;  %v2153_v27 = vrot.slane %v5344_v40, 4  ;;  %v5347_v47 = vmax.f32 %v5345_v15, %v5346_v42  ;;  %v5350_v63 = vld [vmem:[#allocation6_spill] sm:$0xff] }
 0x23b   :  { %v2168_v34 = vmax.f32 %v2166_v35, %v2167_v45  ;;  %v3612_v23 = vpop.eup %3611  ;;  %3615 = vrcp.f32 %v2690_v7  ;;  %v2472_v2 = vmax.f32 %v5343_v8, %v2471_v9  ;;  %v2599_v50 = vrot.slane %v2492_v29, 4 }
 0x23c   :  { %v2184_v3 = vmax.f32 %v5347_v47, %v5344_v40  ;;  %v2505_v6 = vadd.f32 %v2458_v28, %v2199_v26  ;;  %v2696_v51 = vadd.f32 1.0, %v3612_v23  ;;  %v2585_v59 = vrot.slane %v2584_v32, 1 }
 0x23d   :  { %v2169_v12 = vrot.slane %v2168_v34, 1  ;;  %v2154_v49 = vmax.f32 %v5344_v40, %v2153_v27  ;;  %3617 = vrcp.f32 %v2695_v60  ;;  %v2473_v54 = vrot.slane %v2472_v2, 2 }
 0x23e   :  { %v2600_v58 = vadd.f32 %v2599_v50, %v2492_v29  ;;  %v2459_v55 = vrot.slane %v5348_v37, 4  ;;  %3619 = vrcp.f32 %v2693_v11  ;;  %v2586_v48 = vadd.f32 %v2585_v59, %v2584_v32 }
 0x23f   :  { %v2170_v1 = vmax.f32 %v2168_v34, %v2169_v12  ;;  %v2155_v46 = vrot.slane %v2154_v49, 2  ;;  %3621 = vrcp.f32 %v2696_v51  ;;  %v2474_v7 = vmax.f32 %v2472_v2, %v2473_v54 }
 0x240   :  { %v2601_v20 = vrot.slane %v2600_v58, 2  ;;  %v2460_v16 = vmax.f32 %v5348_v37, %v2459_v55  ;;  %v2617_v5 = vadd.f32 %v2586_v48, %v2505_v6  ;;  %v2490_v19 = vmax.f32 %v2184_v3, %v5348_v37 }
 0x241   :  { %v2202_v44 = vadd.f32 %v2170_v1, %v5349_v61  ;;  %v2156_v18 = vmax.f32 %v2154_v49, %v2155_v46  ;;  %v2475_v10 = vrot.slane %v2474_v7, 1  ;;  %v2750_v36 = vsel %vm2749_vm1, %v5039_v14, %v5032_v4 }
 0x242   :  { %v2602_v13 = vadd.f32 %v2601_v20, %v2600_v58  ;;  %v2461_v33 = vrot.slane %v2460_v16, 2  ;;  %v3614_v30 = vpop.eup %3613  ;;  %v3050_v60 = vmul.f32 -0.0625, %v2617_v5  ;;  %v2587_v52 = vrot.slane %v2490_v19, 4 }
 0x243   :  { %v2157_v56 = vrot.slane %v2156_v18, 1  ;;  %v2752_v53 = vsel %vm2751_vm2, %v5010_v39, %v2750_v36  ;;  %v2694_v25 = vadd.f32 1.0, %v3614_v30  ;;  %v2476_v0 = vmax.f32 %v2474_v7, %v2475_v10 }
 0x244   :  { %v2603_v21 = vrot.slane %v2602_v13, 1  ;;  %v2462_v35 = vmax.f32 %v2460_v16, %v2461_v33  ;;  %v2677_v11 = vmul.f32 1.442695, %v3050_v60  ;;  %v2588_v31 = vadd.f32 %v2587_v52, %v2490_v19 }
 0x245   :  { %v2158_v57 = vmax.f32 %v2156_v18, %v2157_v56  ;;  %v2754_v62 = vsel %vm2753_vm3, %v5035_v22, %v2752_v53  ;;  %v3616_v43 = vpop.eup %3615  ;;  %3623 = vrcp.f32 %v2694_v25  ;;  %v2508_v4 = vadd.f32 %v2476_v0, %v2202_v44 }
 0x246   :  { %v2604_v14 = vadd.f32 %v2603_v21, %v2602_v13  ;;  %v2463_v26 = vrot.slane %v2462_v35, 1  ;;  %3625 = vpow2.f32 %v2677_v11  ;;  %v2589_v28 = vrot.slane %v2588_v31, 2 }
 0x247   :  { %v2200_v45 = vadd.f32 %v2158_v57, %v5350_v63  ;;  %v3618_v39 = vpop.eup %3617  ;;  %v2756_v29 = vsel %vm2755_vm4, %v5061_v41, %v2754_v62  ;;  %v3052_v27 = vmul.f32 -0.0625, %v5085_v38 }
 0x248   :  { %v2620_v8 = vadd.f32 %v2604_v14, %v2508_v4  ;;  %v2464_v9 = vmax.f32 %v2462_v35, %v2463_v26  ;;  %v3620_v32 = vpop.eup %3619  ;;  %v2590_v34 = vadd.f32 %v2589_v28, %v2588_v31  ;;  %v2758_v22 = vsel %vm2757_vm5, %v3616_v43, %v2756_v29 }
 0x249   :  { %v3622_v40 = vpop.eup %3621  ;;  %v2760_v42 = vsel %vm2759_vm6, %v5058_v24, %v2758_v22  ;;  %v2681_v6 = vmul.f32 1.442695, %v3052_v27 }
 0x24a   :  { %v2506_v15 = vadd.f32 %v2464_v9, %v2200_v45  ;;  %v3053_v47 = vmul.f32 -0.0625, %v2620_v8  ;;  %v2591_v3 = vrot.slane %v2590_v34, 1  ;;  %v2762_v23 = vsel %vm2761_vm7, %v5082_v17, %v2760_v42 }
 0x24b   :  { %2772 = vst [vmem:[#allocation2] sm:$0xff] %v2762_v23  ;;  %3627 = vpow2.f32 %v2681_v6 }
 0x24c   :  { %v2592_v41 = vadd.f32 %v2591_v3, %v2590_v34  ;;  %v2683_v2 = vmul.f32 1.442695, %v3053_v47 }
 0x24e   :  { %v2618_v50 = vadd.f32 %v2592_v41, %v2506_v15  ;;  %3629 = vpow2.f32 %v2683_v2 }
 0x24f   :  { %v3624_v51 = vpop.eup %3623 }
 0x250   :  { %v3626_v59 = vpop.eup %3625  ;;  %v3051_v12 = vmul.f32 -0.0625, %v2618_v50  ;;  %v2763_v49 = vsel %vm2749_vm1, %v3624_v51, %v3620_v32 }
 0x251   :  { %v2697_v38 = vadd.f32 1.0, %v3626_v59  ;;  %v2764_v54 = vsel %vm2751_vm2, %v3618_v39, %v2763_v49 }
 0x252   :  { %v2679_v24 = vmul.f32 1.442695, %v3051_v12  ;;  %v2765_v58 = vsel %vm2753_vm3, %v3622_v40, %v2764_v54 }
 0x253   :  { %3631 = vrcp.f32 %v2697_v38 }
 0x254   :  { %3633 = vpow2.f32 %v2679_v24 }
 0x255   :  { %v3628_v17 = vpop.eup %3627 }
 0x256   :  { %v2699_v1 = vadd.f32 1.0, %v3628_v17 }
 0x258   :  { %v3630_v37 = vpop.eup %3629 }
 0x259   :  { %v2700_v7 = vadd.f32 1.0, %v3630_v37 }
 0x25d   :  { %v3632_v55 = vpop.eup %3631 }
 0x25e   :  { %v3634_v48 = vpop.eup %3633  ;;  %v2766_v46 = vsel %vm2755_vm4, %v3632_v55, %v2765_v58 }
 0x25f   :  { %v2698_v20 = vadd.f32 1.0, %v3634_v48 }
 0x261   :  { %3635 = vrcp.f32 %v2698_v20 }
 0x262   :  { %3637 = vrcp.f32 %v2699_v1 }
 0x263   :  { %3639 = vrcp.f32 %v2700_v7 }
 0x26b   :  { %v3636_v16 = vpop.eup %3635 }
 0x26c   :  { %v3638_v5 = vpop.eup %3637  ;;  %v2767_v61 = vsel %vm2757_vm5, %v3636_v16, %v2766_v46 }
 0x26d   :  { %v3640_v44 = vpop.eup %3639  ;;  %v2768_v18 = vsel %vm2759_vm6, %v3638_v5, %v2767_v61 }
 0x26e   :  { %v2769_v19 = vsel %vm2761_vm7, %v3640_v44, %v2768_v18 }
 0x26f   :  { %2773 = vst [vmem:[#allocation2 + $0x8] sm:$0xff] %v2769_v19 }
 0x270   :  { %3652 = shalt.err (!%p3649_p4)
}
 0x271   :  { %s3653_s14 = scalar_lea.hbm %s5137_s2, 256 }
 0x272   :  { %p3654_p5 = scmp.ne.s32.totalorder %s5137_s2, %s3653_s14  ;;  %p3657_p6 = scmp.lt.u32.totalorder %s3653_s14, %s5137_s2 }
 0x274   :  { %p3659_p7 = pnand %p3657_p6, %p3654_p5 }
 0x276   :  { %3662 = shalt.err (!%p3659_p7)
}
 0x277   :  { %s3666_s19 = smov 128   ;;  %s3667_s20 = smov 8  }
 0x278   :  { %2785 = dma.vmem_to_hbm [thread:$0]  %s2780_s10, 256, %s5137_s2, [#allocation3], %s3666_s19, %s3666_s19, %s3667_s20  }
 0x279   :  { %3663 = dma.done.wait [#allocation3], 256  }
 0x27a   :  { %3664 = vsyncadd [#allocation3], 4294967040 }
 0x27b   :  { %2789 = vsyncpa [#allocation3], 1 }

</bundles_post_ra>
